<compile_context>
chip_gen: v7x
topology: tpu7x:2x2x1
jax: 0.10.0
libtpu: 0.0.40
codegen_flags: <defaults>
</compile_context>

<pallas_src>
import functools

import jax
import jax.numpy as jnp
from jax.experimental import pallas as pl
from jax.experimental.pallas import tpu as pltpu

SQRT2 = 1.4142135623730951


def _radial_bn_kernel(w_ref, b_ref, x_ref, o_ref, *, eps):
    # x_ref block: (2, H, W, T) -- [0]=real, [1]=imag, T independent planes on lanes.
    xr = x_ref[0]                                   # (H, W, T)
    xi = x_ref[1]                                   # (H, W, T)
    H = xr.shape[0]
    W = xr.shape[1]

    # --- one rsqrt gives both |x| and 1/|x| (single EUP pass) -----------------
    sq = xr * xr + xi * xi                          # (H, W, T)
    nonzero = sq > 0.0
    inv_mag = jax.lax.rsqrt(jnp.where(nonzero, sq, 1.0))
    mag = sq * inv_mag                              # == sqrt(sq); exactly 0 at sq==0

    # --- reductions on raw mag; scale folded into per-lane constants ----------
    s_h = jnp.sum(mag, axis=0, keepdims=True)                         # (1, W, T)
    m_h = s_h * (1.0 / H)
    mu = jnp.sum(s_h, axis=1, keepdims=True) * (1.0 / (H * W))        # (1, 1, T)
    scale = SQRT2 / mu                                                # per-lane

    d = mag - m_h                                                     # (H, W, T)
    var_h = jnp.sum(d * d, axis=0, keepdims=True) * (1.0 / (H - 1))   # (1, W, T)
    m_v = jnp.mean(var_h, axis=1, keepdims=True)                      # (1, 1, T)
    dv = var_h - m_v
    var_raw = jnp.sum(dv * dv, axis=1, keepdims=True) * (1.0 / (W - 1))
    s2 = scale * scale
    var = var_raw * s2 * s2                          # var of mag_centered (exact fold)

    # --- affine normalization collapsed to one per-lane FMA -------------------
    w = w_ref[...]                                   # (1, 1, T)
    b = b_ref[...]                                   # (1, 1, T)
    inv_denom = 1.0 / (w * jnp.sqrt(var + eps))      # per-lane exact divide
    k1 = b * scale * inv_denom                       # (1, 1, T)
    k0 = (b * SQRT2) * (1.0 - inv_denom)             # (1, 1, T)

    # --- polar -> cylindrical, fused ratio form -------------------------------
    # mag_n = mag*k1 + k0 ; out = (mag_n / |x|) * x
    ratio = (mag * k1 + k0) * inv_mag                # (H, W, T)
    # sq == 0: reference gives phase = atan2(0,0) = 0 -> (mag_n, 0) = (k0, 0)
    o_ref[0] = jnp.where(nonzero, ratio * xr, k0)
    o_ref[1] = ratio * xi                            # xi == 0 wherever sq == 0


def _vmem_budget_bytes():
    """Per-generation scoped-VMEM budget (bytes), with headroom."""
    kind = ""
    try:
        kind = jax.devices()[0].device_kind.lower()
    except Exception:
        pass
    if "v7" in kind:
        return 44 * 1024 * 1024    # 64 MiB physical per TC -> stay well under
    if "v5" in kind or "v6" in kind:
        return 96 * 1024 * 1024    # 128 MiB physical -> allow big, BW-efficient tiles
    return 32 * 1024 * 1024        # unknown chip: conservative


def _pick_tile_b(B, H, W, budget):
    """Largest lane tile that fits the VMEM budget. Never pads the array in HBM."""
    # Per lane column: 4 double-buffered (2,H,W,.) f32 io blocks + ~3 full-tile temps.
    per_lane = (4 * 2 + 3) * H * W * 4
    t_max = budget // max(per_lane, 1)
    t_max = max(128, min(1024, (t_max // 128) * 128))
    if B <= t_max:
        return B                   # single block; full-dim lane block is always legal
    return t_max                   # multiple of 128; ragged last block is masked


def radial_batch_normalize_planar(x_planar, w_lane, b_lane, *, eps=1e-5):
    """Fast path: no relayout around the kernel (1 HBM read + 1 HBM write total).

    x_planar: (2, H, W, B) float32, B = N*C independent planes on the lane axis
              (lane i = n*C + c).  [0] = real plane, [1] = imag plane.
    w_lane, b_lane: (B,) float32 per-plane affine parameters.
    Returns (2, H, W, B) float32.
    """
    two, H, W, B = x_planar.shape
    assert two == 2
    assert H >= 2 and W >= 2, "unbiased variance needs H >= 2 and W >= 2"

    budget = _vmem_budget_bytes()
    tile_b = _pick_tile_b(B, H, W, budget)
    num_tiles = pl.cdiv(B, tile_b)

    w3 = w_lane.astype(jnp.float32).reshape(1, 1, B)
    b3 = b_lane.astype(jnp.float32).reshape(1, 1, B)

    x_spec = pl.BlockSpec((2, H, W, tile_b), lambda i: (0, 0, 0, i))
    p_spec = pl.BlockSpec((1, 1, tile_b), lambda i: (0, 0, i))

    # VMEM limit from actual block bytes + temp estimate, capped per generation.
    block_io = 2 * (2 * H * W * tile_b * 4)          # one input block + one output block
    temps = 3 * H * W * tile_b * 4                   # live full-tile f32 temporaries
    vmem_limit = int(min(max(2 * block_io + temps + (1 << 20), 16 << 20), budget))

    kernel = functools.partial(_radial_bn_kernel, eps=eps)

    return pl.pallas_call(
        kernel,
        out_shape=jax.ShapeDtypeStruct((2, H, W, B), jnp.float32),
        grid=(num_tiles,),
        in_specs=[p_spec, p_spec, x_spec],
        out_specs=x_spec,
        compiler_params=pltpu.CompilerParams(
            dimension_semantics=("parallel",),
            vmem_limit_bytes=vmem_limit),
    )(w3, b3, x_planar.astype(jnp.float32))


@functools.partial(jax.jit, static_argnames=("eps",))
def radial_batch_normalize(x, weight, bias, *, eps=1e-5):
    """Drop-in interface: x (N, C, H, W, 2) f32, weight/bias (C,) f32.

    NOTE: the boundary transposes here exist only for PyTorch-layout parity; in a
    model, feed `radial_batch_normalize_planar` directly and keep activations in
    the planar (2, H, W, N*C) layout end-to-end to avoid the extra HBM passes.
    """
    N, C, H, W, two = x.shape
    assert two == 2
    B = N * C

    xt = jnp.transpose(x.astype(jnp.float32), (4, 2, 3, 0, 1)).reshape(2, H, W, B)
    w_lane = jnp.tile(weight.astype(jnp.float32), N)   # lane i = n*C + c
    b_lane = jnp.tile(bias.astype(jnp.float32), N)

    out = radial_batch_normalize_planar(xt, w_lane, b_lane, eps=eps)

    out = out.reshape(2, H, W, N, C)
    return jnp.transpose(out, (3, 4, 1, 2, 0))


def _reference(x, weight, bias, eps=1e-5):
    """Pure-JAX reference mirroring the PyTorch forward (eval mode)."""
    xr = x[..., 0]
    xi = x[..., 1]
    mag = jnp.sqrt(xr * xr + xi * xi)
    phase = jnp.arctan2(xi, xr)
    mu = jnp.mean(jnp.mean(mag, axis=2, keepdims=True), axis=3, keepdims=True)
    mag_c = SQRT2 * mag / mu
    var_h = jnp.var(mag_c, axis=2, keepdims=True, ddof=1)
    var = jnp.var(var_h, axis=3, keepdims=True, ddof=1)
    w = weight[None, :, None, None]
    b = bias[None, :, None, None]
    mag_n = b * ((mag_c - SQRT2) / (w * jnp.sqrt(var + eps)) + SQRT2)
    return jnp.stack((mag_n * jnp.cos(phase), mag_n * jnp.sin(phase)), axis=-1)


if __name__ == "__main__":
    key = jax.random.PRNGKey(0)
    k_x, k_w, k_b = jax.random.split(key, 3)

    N, C, H, W = 2, 4, 16, 16
    x = jax.random.normal(k_x, (N, C, H, W, 2), dtype=jnp.float32)
    # reset_parameters(): weight/bias ~ U[0, 1); keep weight away from 0 for stability
    weight = jax.random.uniform(k_w, (C,), dtype=jnp.float32, minval=0.1, maxval=1.0)
    bias = jax.random.uniform(k_b, (C,), dtype=jnp.float32)

    out = radial_batch_normalize(x, weight, bias, eps=1e-5)
    out = jax.block_until_ready(out)

    ref = _reference(x, weight, bias, eps=1e-5)
    assert out.shape == (N, C, H, W, 2)
    assert jnp.allclose(out, ref, atol=1e-4, rtol=1e-4), "mismatch vs reference"

    print("KERNEL_OK")
</pallas_src>

<mosaic_0001>
module attributes {stable_mosaic.version = 11 : i64} {
  func.func @_radial_bn_kernel(%arg0: i32, %arg1: memref<1x1x8xf32, #tpu.memory_space<vmem>>, %arg2: memref<1x1x8xf32, #tpu.memory_space<vmem>>, %arg3: memref<2x16x16x8xf32, #tpu.memory_space<vmem>>, %arg4: memref<2x16x16x8xf32, #tpu.memory_space<vmem>>) attributes {dimension_semantics = [#tpu.dimension_semantics<parallel>], iteration_bounds = array<i64: 1>, scalar_prefetch = 0 : i64, scratch_operands = 0 : i64, tpu.core_type = #tpu.core_type<tc>, window_params = [{transform_indices = @transform_0, window_bounds = array<i64: 1, 1, 8>}, {transform_indices = @transform_1, window_bounds = array<i64: 1, 1, 8>}, {transform_indices = @transform_2, window_bounds = array<i64: 2, 16, 16, 8>}, {transform_indices = @transform_3, window_bounds = array<i64: 2, 16, 16, 8>}]} {
    %c0 = arith.constant 0 : index
    %c0_0 = arith.constant 0 : index
    %c0_1 = arith.constant 0 : index
    %c0_2 = arith.constant 0 : index
    %0 = vector.load %arg3[%c0, %c0_0, %c0_1, %c0_2] : memref<2x16x16x8xf32, #tpu.memory_space<vmem>>, vector<1x16x16x8xf32>
    %1 = vector.shape_cast %0 : vector<1x16x16x8xf32> to vector<16x16x8xf32>
    %c1 = arith.constant 1 : index
    %c0_3 = arith.constant 0 : index
    %c0_4 = arith.constant 0 : index
    %c0_5 = arith.constant 0 : index
    %2 = vector.load %arg3[%c1, %c0_3, %c0_4, %c0_5] : memref<2x16x16x8xf32, #tpu.memory_space<vmem>>, vector<1x16x16x8xf32>
    %3 = vector.shape_cast %2 : vector<1x16x16x8xf32> to vector<16x16x8xf32>
    %4 = arith.mulf %1, %1 : vector<16x16x8xf32>
    %5 = arith.mulf %3, %3 : vector<16x16x8xf32>
    %6 = arith.addf %4, %5 : vector<16x16x8xf32>
    %cst = arith.constant 0.000000e+00 : f32
    %7 = vector.broadcast %cst : f32 to vector<16x16x8xf32>
    %8 = arith.cmpf ogt, %6, %7 : vector<16x16x8xf32>
    %cst_6 = arith.constant 1.000000e+00 : f32
    %9 = vector.broadcast %cst_6 : f32 to vector<16x16x8xf32>
    %10 = arith.select %8, %6, %9 : vector<16x16x8xi1>, vector<16x16x8xf32>
    %11 = math.rsqrt %10 : vector<16x16x8xf32>
    %12 = arith.mulf %6, %11 : vector<16x16x8xf32>
    %cst_7 = arith.constant dense<0.000000e+00> : vector<16x8xf32>
    %13 = vector.multi_reduction <add>, %12, %cst_7 [0] : vector<16x16x8xf32> to vector<16x8xf32>
    %14 = vector.shape_cast %13 : vector<16x8xf32> to vector<1x16x8xf32>
    %cst_8 = arith.constant 6.250000e-02 : f32
    %15 = vector.broadcast %cst_8 : f32 to vector<1x16x8xf32>
    %16 = arith.mulf %14, %15 : vector<1x16x8xf32>
    %cst_9 = arith.constant dense<0.000000e+00> : vector<1x8xf32>
    %17 = vector.multi_reduction <add>, %14, %cst_9 [1] : vector<1x16x8xf32> to vector<1x8xf32>
    %18 = vector.shape_cast %17 : vector<1x8xf32> to vector<1x1x8xf32>
    %cst_10 = arith.constant 3.906250e-03 : f32
    %19 = vector.broadcast %cst_10 : f32 to vector<1x1x8xf32>
    %20 = arith.mulf %18, %19 : vector<1x1x8xf32>
    %cst_11 = arith.constant 1.41421354 : f32
    %21 = vector.broadcast %cst_11 : f32 to vector<1x1x8xf32>
    %22 = arith.divf %21, %20 : vector<1x1x8xf32>
    %23 = vector.broadcast %16 : vector<1x16x8xf32> to vector<16x16x8xf32>
    %24 = arith.subf %12, %23 : vector<16x16x8xf32>
    %25 = arith.mulf %24, %24 : vector<16x16x8xf32>
    %cst_12 = arith.constant dense<0.000000e+00> : vector<16x8xf32>
    %26 = vector.multi_reduction <add>, %25, %cst_12 [0] : vector<16x16x8xf32> to vector<16x8xf32>
    %27 = vector.shape_cast %26 : vector<16x8xf32> to vector<1x16x8xf32>
    %cst_13 = arith.constant 0.0666666701 : f32
    %28 = vector.broadcast %cst_13 : f32 to vector<1x16x8xf32>
    %29 = arith.mulf %27, %28 : vector<1x16x8xf32>
    %cst_14 = arith.constant dense<0.000000e+00> : vector<1x8xf32>
    %30 = vector.multi_reduction <add>, %29, %cst_14 [1] : vector<1x16x8xf32> to vector<1x8xf32>
    %31 = vector.shape_cast %30 : vector<1x8xf32> to vector<1x1x8xf32>
    %cst_15 = arith.constant 1.600000e+01 : f32
    %32 = vector.broadcast %cst_15 : f32 to vector<1x1x8xf32>
    %33 = arith.divf %31, %32 : vector<1x1x8xf32>
    %34 = vector.broadcast %33 : vector<1x1x8xf32> to vector<1x16x8xf32>
    %35 = arith.subf %29, %34 : vector<1x16x8xf32>
    %36 = arith.mulf %35, %35 : vector<1x16x8xf32>
    %cst_16 = arith.constant dense<0.000000e+00> : vector<1x8xf32>
    %37 = vector.multi_reduction <add>, %36, %cst_16 [1] : vector<1x16x8xf32> to vector<1x8xf32>
    %38 = vector.shape_cast %37 : vector<1x8xf32> to vector<1x1x8xf32>
    %cst_17 = arith.constant 0.0666666701 : f32
    %39 = vector.broadcast %cst_17 : f32 to vector<1x1x8xf32>
    %40 = arith.mulf %38, %39 : vector<1x1x8xf32>
    %41 = arith.mulf %22, %22 : vector<1x1x8xf32>
    %42 = arith.mulf %40, %41 : vector<1x1x8xf32>
    %43 = arith.mulf %42, %41 : vector<1x1x8xf32>
    %c0_18 = arith.constant 0 : index
    %c0_19 = arith.constant 0 : index
    %c0_20 = arith.constant 0 : index
    %44 = vector.load %arg1[%c0_18, %c0_19, %c0_20] : memref<1x1x8xf32, #tpu.memory_space<vmem>>, vector<1x1x8xf32>
    %c0_21 = arith.constant 0 : index
    %c0_22 = arith.constant 0 : index
    %c0_23 = arith.constant 0 : index
    %45 = vector.load %arg2[%c0_21, %c0_22, %c0_23] : memref<1x1x8xf32, #tpu.memory_space<vmem>>, vector<1x1x8xf32>
    %cst_24 = arith.constant 9.99999974E-6 : f32
    %46 = vector.broadcast %cst_24 : f32 to vector<1x1x8xf32>
    %47 = arith.addf %43, %46 : vector<1x1x8xf32>
    %48 = math.sqrt %47 : vector<1x1x8xf32>
    %49 = arith.mulf %44, %48 : vector<1x1x8xf32>
    %cst_25 = arith.constant 1.000000e+00 : f32
    %50 = vector.broadcast %cst_25 : f32 to vector<1x1x8xf32>
    %51 = arith.divf %50, %49 : vector<1x1x8xf32>
    %52 = arith.mulf %45, %22 : vector<1x1x8xf32>
    %53 = arith.mulf %52, %51 : vector<1x1x8xf32>
    %cst_26 = arith.constant 1.41421354 : f32
    %54 = vector.broadcast %cst_26 : f32 to vector<1x1x8xf32>
    %55 = arith.mulf %45, %54 : vector<1x1x8xf32>
    %cst_27 = arith.constant 1.000000e+00 : f32
    %56 = vector.broadcast %cst_27 : f32 to vector<1x1x8xf32>
    %57 = arith.subf %56, %51 : vector<1x1x8xf32>
    %58 = arith.mulf %55, %57 : vector<1x1x8xf32>
    %59 = vector.broadcast %53 : vector<1x1x8xf32> to vector<16x16x8xf32>
    %60 = arith.mulf %12, %59 : vector<16x16x8xf32>
    %61 = vector.broadcast %58 : vector<1x1x8xf32> to vector<16x16x8xf32>
    %62 = arith.addf %60, %61 : vector<16x16x8xf32>
    %63 = arith.mulf %62, %11 : vector<16x16x8xf32>
    %64 = arith.mulf %63, %1 : vector<16x16x8xf32>
    %65 = vector.shape_cast %58 : vector<1x1x8xf32> to vector<1x1x8xf32>
    %66 = vector.broadcast %65 : vector<1x1x8xf32> to vector<16x16x8xf32>
    %67 = arith.select %8, %64, %66 : vector<16x16x8xi1>, vector<16x16x8xf32>
    %c0_28 = arith.constant 0 : index
    %c0_29 = arith.constant 0 : index
    %c0_30 = arith.constant 0 : index
    %c0_31 = arith.constant 0 : index
    %68 = vector.load %arg4[%c0_28, %c0_29, %c0_30, %c0_31] : memref<2x16x16x8xf32, #tpu.memory_space<vmem>>, vector<1x16x16x8xf32>
    %69 = vector.shape_cast %68 : vector<1x16x16x8xf32> to vector<16x16x8xf32>
    %70 = vector.shape_cast %67 : vector<16x16x8xf32> to vector<1x16x16x8xf32>
    tpu.vector_store %arg4[%c0_28, %c0_29, %c0_30, %c0_31], %70 {strides = array<i32>} : memref<2x16x16x8xf32, #tpu.memory_space<vmem>>, vector<1x16x16x8xf32>,
    %71 = arith.mulf %63, %3 : vector<16x16x8xf32>
    %c1_32 = arith.constant 1 : index
    %c0_33 = arith.constant 0 : index
    %c0_34 = arith.constant 0 : index
    %c0_35 = arith.constant 0 : index
    %72 = vector.load %arg4[%c1_32, %c0_33, %c0_34, %c0_35] : memref<2x16x16x8xf32, #tpu.memory_space<vmem>>, vector<1x16x16x8xf32>
    %73 = vector.shape_cast %72 : vector<1x16x16x8xf32> to vector<16x16x8xf32>
    %74 = vector.shape_cast %71 : vector<16x16x8xf32> to vector<1x16x16x8xf32>
    tpu.vector_store %arg4[%c1_32, %c0_33, %c0_34, %c0_35], %74 {strides = array<i32>} : memref<2x16x16x8xf32, #tpu.memory_space<vmem>>, vector<1x16x16x8xf32>,
    return
  }
  func.func @transform_0(%arg0: i32) -> (i32, i32, i32) {
    %c0_i32 = arith.constant 0 : i32
    %c0_i32_0 = arith.constant 0 : i32
    %c0_i32_1 = arith.constant 0 : i32
    return %c0_i32, %c0_i32_0, %arg0 : i32, i32, i32
  }
  func.func @transform_1(%arg0: i32) -> (i32, i32, i32) {
    %c0_i32 = arith.constant 0 : i32
    %c0_i32_0 = arith.constant 0 : i32
    %c0_i32_1 = arith.constant 0 : i32
    return %c0_i32, %c0_i32_0, %arg0 : i32, i32, i32
  }
  func.func @transform_2(%arg0: i32) -> (i32, i32, i32, i32) {
    %c0_i32 = arith.constant 0 : i32
    %c0_i32_0 = arith.constant 0 : i32
    %c0_i32_1 = arith.constant 0 : i32
    %c0_i32_2 = arith.constant 0 : i32
    return %c0_i32, %c0_i32_0, %c0_i32_1, %arg0 : i32, i32, i32, i32
  }
  func.func @transform_3(%arg0: i32) -> (i32, i32, i32, i32) {
    %c0_i32 = arith.constant 0 : i32
    %c0_i32_0 = arith.constant 0 : i32
    %c0_i32_1 = arith.constant 0 : i32
    %c0_i32_2 = arith.constant 0 : i32
    return %c0_i32, %c0_i32_0, %c0_i32_1, %arg0 : i32, i32, i32, i32
  }
}

</mosaic_0001>

<bundles_post_ra>
// kernel: tile.13
= control target key start
LH: loop header
LB: loop body
LE: loop exit
PB: predicated region body
PF: predicated region fallthrough
CT: control target
= control target key end

     0   :  { %s22_s0 = inlined_call_operand.vmem [shape: f32[4], index: 0, kind: input, shape index: {}]   ;;  %s23_s1 = inlined_call_operand.vmem [shape: f32[2,4], index: 1, kind: output, shape index: {}]  }
   0x1   :  { %v4_v0 = vld [vmem:[%s22_s0] ss:$0 sm:$0xff] }
   0x2   :  { %5 = vst [vmem:[%s23_s1] sm:$0x3] %v4_v0 }

// kernel: tile.18
= control target key start
LH: loop header
LB: loop body
LE: loop exit
PB: predicated region body
PF: predicated region fallthrough
CT: control target
= control target key end

     0   :  { %vm7_vm0 = vcmask 31744   ;;  %vm13_vm1 = vcmask 64544   ;;  %s39_s0 = inlined_call_operand.vmem [shape: f32[2,4], index: 0, kind: input, shape index: {}]   ;;  %s40_s1 = inlined_call_operand.vmem [shape: f32[1,1,8], index: 1, kind: output, shape index: {}]  }
   0x1   :  { %v4_v0 = vld [vmem:[%s39_s0] sm:$0x3]  ;;  %s22_s0 = smov 4  }
   0x2   :  { %5 = vst [vmem:[#allocation1] sm:$0x3] %v4_v0 }
   0x9   :  { %v10_v1 = vld [vmem:[#allocation1 + $0x1] sm:$0x1]   ;;  %v6_v2 = vld [vmem:[#allocation1] sm:$0x1]  }
   0xa   :  { %11 = vrot.lane.b32.xlu0 %v10_v1, %s22_s0  ;;  %8 = vst.msk [vmem:[#allocation0] sm:$0x1] %vm7_vm0, %v6_v2  }
  0x7c   :  { %v12_v3 = vpop.permute.xlu0 %11  }
  0x7d   :  { %14 = vst.msk [vmem:[#allocation0] sm:$0x1] %vm13_vm1, %v12_v3  }
  0x84   :  { %v18_v4 = vld [vmem:[#allocation0] sm:$0x1] }
  0x85   :  { %20 = vst [vmem:[%s40_s1] sm:$0x1] %v18_v4 }

// kernel: radial_batch_normalize.1
= control target key start
LH: loop header
LB: loop body
LE: loop exit
PB: predicated region body
PF: predicated region fallthrough
CT: control target
= control target key end

     0   :  { %s2730_s2 = inlined_call_operand.vmem [shape: f32[2,16,16,8], index: 2, kind: input, shape index: {}]   ;;  %s2731_s0 = inlined_call_operand.vmem [shape: f32[1,1,8], index: 0, kind: input, shape index: {}]   ;;  %s2732_s1 = inlined_call_operand.vmem [shape: f32[1,1,8], index: 1, kind: input, shape index: {}]   ;;  %s2733_s3 = inlined_call_operand.vmem [shape: f32[2,16,16,8], index: 3, kind: output, shape index: {}]  }
   0x1   :  { %v14_v0 = vld [vmem:[%s2730_s2] sm:$0xff]  ;;  %v15_v1 = vld [vmem:[%s2730_s2 + $0x8] sm:$0xff]  ;;  %v16_v2 = vld [vmem:[%s2730_s2 + $0x10] sm:$0xff] }
   0x2   :  { %v17_v3 = vld [vmem:[%s2730_s2 + $0x18] sm:$0xff]  ;;  %v18_v4 = vld [vmem:[%s2730_s2 + $0x20] sm:$0xff]  ;;  %v19_v5 = vld [vmem:[%s2730_s2 + $0x28] sm:$0xff]  ;;  %v1108_v21 = vmul.f32 %v14_v0, %v14_v0  ;;  %v1110_v22 = vmul.f32 %v15_v1, %v15_v1  ;;  %v1112_v23 = vmul.f32 %v16_v2, %v16_v2 }
   0x3   :  { %v20_v6 = vld [vmem:[%s2730_s2 + $0x30] sm:$0xff]  ;;  %v21_v7 = vld [vmem:[%s2730_s2 + $0x38] sm:$0xff]  ;;  %v22_v8 = vld [vmem:[%s2730_s2 + $0x40] sm:$0xff]  ;;  %v1114_v24 = vmul.f32 %v17_v3, %v17_v3  ;;  %v1125_v28 = vmul.f32 %v18_v4, %v18_v4  ;;  %v1127_v29 = vmul.f32 %v19_v5, %v19_v5 }
   0x4   :  { %v23_v9 = vld [vmem:[%s2730_s2 + $0x48] sm:$0xff]  ;;  %v24_v10 = vld [vmem:[%s2730_s2 + $0x50] sm:$0xff]  ;;  %v25_v11 = vld [vmem:[%s2730_s2 + $0x58] sm:$0xff]  ;;  %v1129_v30 = vmul.f32 %v20_v6, %v20_v6  ;;  %v1131_v31 = vmul.f32 %v21_v7, %v21_v7  ;;  %v1142_v35 = vmul.f32 %v22_v8, %v22_v8 }
   0x5   :  { %v26_v12 = vld [vmem:[%s2730_s2 + $0x60] sm:$0xff]  ;;  %v27_v13 = vld [vmem:[%s2730_s2 + $0x68] sm:$0xff]  ;;  %v28_v14 = vld [vmem:[%s2730_s2 + $0x70] sm:$0xff]  ;;  %v1144_v36 = vmul.f32 %v23_v9, %v23_v9  ;;  %v1146_v37 = vmul.f32 %v24_v10, %v24_v10  ;;  %v1148_v38 = vmul.f32 %v25_v11, %v25_v11 }
   0x6   :  { %v29_v15 = vld [vmem:[%s2730_s2 + $0x78] sm:$0xff]  ;;  %v30_v16 = vld [vmem:[%s2730_s2 + $0x80] sm:$0xff]  ;;  %v31_v17 = vld [vmem:[%s2730_s2 + $0x88] sm:$0xff]  ;;  %v1159_v42 = vmul.f32 %v26_v12, %v26_v12  ;;  %v1161_v43 = vmul.f32 %v27_v13, %v27_v13  ;;  %v1163_v44 = vmul.f32 %v28_v14, %v28_v14 }
   0x7   :  { %v32_v18 = vld [vmem:[%s2730_s2 + $0x90] sm:$0xff]  ;;  %v33_v19 = vld [vmem:[%s2730_s2 + $0x98] sm:$0xff]  ;;  %v34_v20 = vld [vmem:[%s2730_s2 + $0xa0] sm:$0xff]  ;;  %v1165_v45 = vmul.f32 %v29_v15, %v29_v15  ;;  %v1176_v49 = vmul.f32 %v30_v16, %v30_v16  ;;  %v1178_v50 = vmul.f32 %v31_v17, %v31_v17 }
   0x8   :  { %v35_v25 = vld [vmem:[%s2730_s2 + $0xa8] sm:$0xff]  ;;  %v36_v26 = vld [vmem:[%s2730_s2 + $0xb0] sm:$0xff]  ;;  %v37_v27 = vld [vmem:[%s2730_s2 + $0xb8] sm:$0xff]  ;;  %v1180_v51 = vmul.f32 %v32_v18, %v32_v18  ;;  %v1182_v52 = vmul.f32 %v33_v19, %v33_v19  ;;  %v1193_v56 = vmul.f32 %v34_v20, %v34_v20 }
   0x9   :  { %v38_v32 = vld [vmem:[%s2730_s2 + $0xc0] sm:$0xff]  ;;  %v39_v33 = vld [vmem:[%s2730_s2 + $0xc8] sm:$0xff]  ;;  %v40_v39 = vld [vmem:[%s2730_s2 + $0xd0] sm:$0xff]  ;;  %v1195_v57 = vmul.f32 %v35_v25, %v35_v25  ;;  %v1197_v58 = vmul.f32 %v36_v26, %v36_v26  ;;  %v1208_v63 = vmul.f32 %v37_v27, %v37_v27 }
   0xa   :  { %v827_v34 = vld [vmem:[%s2730_s2 + $0x100] sm:$0xff]  ;;  %v41_v40 = vld [vmem:[%s2730_s2 + $0xd8] sm:$0xff]  ;;  %v828_v41 = vld [vmem:[%s2730_s2 + $0x108] sm:$0xff]  ;;  %v1210_v0 = vmul.f32 %v38_v32, %v38_v32  ;;  %v1212_v1 = vmul.f32 %v39_v33, %v39_v33  ;;  %v1223_v6 = vmul.f32 %v40_v39, %v40_v39 }
   0xb   :  { %v42_v46 = vld [vmem:[%s2730_s2 + $0xe0] sm:$0xff]  ;;  %v43_v47 = vld [vmem:[%s2730_s2 + $0xe8] sm:$0xff]  ;;  %v829_v48 = vld [vmem:[%s2730_s2 + $0x110] sm:$0xff]  ;;  %v111_v59 = vmul.f32 %v827_v34, %v827_v34  ;;  %v112_v2 = vmul.f32 %v828_v41, %v828_v41  ;;  %v1225_v7 = vmul.f32 %v41_v40, %v41_v40 }
   0xc   :  { %v44_v53 = vld [vmem:[%s2730_s2 + $0xf0] sm:$0xff]  ;;  %v45_v54 = vld [vmem:[%s2730_s2 + $0xf8] sm:$0xff]  ;;  %v831_v60 = vld [vmem:[%s2730_s2 + $0x120] sm:$0xff]  ;;  %v1227_v8 = vmul.f32 %v42_v46, %v42_v46  ;;  %v113_v9 = vmul.f32 %v829_v48, %v829_v48  ;;  %v1238_v13 = vmul.f32 %v43_v47, %v43_v47 }
   0xd   :  { %v830_v55 = vld [vmem:[%s2730_s2 + $0x118] sm:$0xff]  ;;  %v832_v61 = vld [vmem:[%s2730_s2 + $0x128] sm:$0xff]  ;;  %v833_v62 = vld [vmem:[%s2730_s2 + $0x130] sm:$0xff]  ;;  %v1240_v14 = vmul.f32 %v44_v53, %v44_v53  ;;  %v1242_v15 = vmul.f32 %v45_v54, %v45_v54  ;;  %v115_v20 = vmul.f32 %v831_v60, %v831_v60  ;;  %v1254_v27 = vadd.f32 %v111_v59, %v1108_v21 }
   0xe   :  { %v834_v3 = vld [vmem:[%s2730_s2 + $0x138] sm:$0xff]  ;;  %v835_v4 = vld [vmem:[%s2730_s2 + $0x140] sm:$0xff]  ;;  %v836_v5 = vld [vmem:[%s2730_s2 + $0x148] sm:$0xff]  ;;  %v114_v16 = vmul.f32 %v830_v55, %v830_v55  ;;  %v116_v25 = vmul.f32 %v832_v61, %v832_v61  ;;  %v117_v26 = vmul.f32 %v833_v62, %v833_v62  ;;  %v1266_v46 = vadd.f32 %v112_v2, %v1110_v22 }
   0xf   :  { %v837_v10 = vld [vmem:[%s2730_s2 + $0x150] sm:$0xff]  ;;  %v838_v11 = vld [vmem:[%s2730_s2 + $0x158] sm:$0xff]  ;;  %v839_v12 = vld [vmem:[%s2730_s2 + $0x160] sm:$0xff]  ;;  %2812 = vst [vmem:[#allocation2_spill] sm:$0xff] %v1242_v15  ;;  %v118_v39 = vmul.f32 %v834_v3, %v834_v3  ;;  %v119_v40 = vmul.f32 %v835_v4, %v835_v4  ;;  %v120_v41 = vmul.f32 %v836_v5, %v836_v5  ;;  %v1278_v59 = vadd.f32 %v113_v9, %v1112_v23 }
  0x10   :  { %v840_v17 = vld [vmem:[%s2730_s2 + $0x168] sm:$0xff]  ;;  %v841_v18 = vld [vmem:[%s2730_s2 + $0x170] sm:$0xff]  ;;  %v842_v19 = vld [vmem:[%s2730_s2 + $0x178] sm:$0xff]  ;;  %2813 = vst [vmem:[#allocation3_spill] sm:$0xff] %v1254_v27  ;;  %v121_v53 = vmul.f32 %v837_v10, %v837_v10  ;;  %v122_v54 = vmul.f32 %v838_v11, %v838_v11  ;;  %v123_v55 = vmul.f32 %v839_v12, %v839_v12  ;;  %v1290_v4 = vadd.f32 %v114_v16, %v1114_v24 }
  0x11   :  { %v843_v32 = vld [vmem:[%s2730_s2 + $0x180] sm:$0xff]  ;;  %v844_v33 = vld [vmem:[%s2730_s2 + $0x188] sm:$0xff]  ;;  %v845_v34 = vld [vmem:[%s2730_s2 + $0x190] sm:$0xff]  ;;  %2814 = vst [vmem:[#allocation4_spill] sm:$0xff] %v1266_v46  ;;  %v124_v62 = vmul.f32 %v840_v17, %v840_v17  ;;  %v125_v2 = vmul.f32 %v841_v18, %v841_v18  ;;  %v126_v3 = vmul.f32 %v842_v19, %v842_v19  ;;  %v1302_v17 = vadd.f32 %v115_v20, %v1125_v28 }
  0x12   :  { %v846_v21 = vld [vmem:[%s2730_s2 + $0x198] sm:$0xff]  ;;  %v847_v47 = vld [vmem:[%s2730_s2 + $0x1a0] sm:$0xff]  ;;  %v848_v48 = vld [vmem:[%s2730_s2 + $0x1a8] sm:$0xff]  ;;  %2815 = vst [vmem:[#allocation5_spill] sm:$0xff] %v1278_v59  ;;  %v127_v10 = vmul.f32 %v843_v32, %v843_v32  ;;  %v128_v11 = vmul.f32 %v844_v33, %v844_v33  ;;  %v129_v12 = vmul.f32 %v845_v34, %v845_v34  ;;  %v1314_v33 = vadd.f32 %v116_v25, %v1127_v29 }
  0x13   :  { %v849_v22 = vld [vmem:[%s2730_s2 + $0x1b0] sm:$0xff]  ;;  %v850_v60 = vld [vmem:[%s2730_s2 + $0x1b8] sm:$0xff]  ;;  %v851_v61 = vld [vmem:[%s2730_s2 + $0x1c0] sm:$0xff]  ;;  %2816 = vst [vmem:[#allocation6_spill] sm:$0xff] %v1290_v4  ;;  %v130_v19 = vmul.f32 %v846_v21, %v846_v21  ;;  %v131_v4 = vmul.f32 %v847_v47, %v847_v47  ;;  %v132_v32 = vmul.f32 %v848_v48, %v848_v48  ;;  %v1320_v59 = vadd.f32 %v117_v26, %v1129_v30 }
  0x14   :  { %v852_v23 = vld [vmem:[%s2730_s2 + $0x1c8] sm:$0xff]  ;;  %v853_v5 = vld [vmem:[%s2730_s2 + $0x1d0] sm:$0xff]  ;;  %v854_v9 = vld [vmem:[%s2730_s2 + $0x1d8] sm:$0xff]  ;;  %2817 = vst [vmem:[#allocation7_spill] sm:$0xff] %v1302_v17  ;;  %v133_v20 = vmul.f32 %v849_v22, %v849_v22  ;;  %v134_v34 = vmul.f32 %v850_v60, %v850_v60  ;;  %v135_v17 = vmul.f32 %v851_v61, %v851_v61  ;;  %v1323_v21 = vadd.f32 %v118_v39, %v1131_v31 }
  0x15   :  { %v855_v24 = vld [vmem:[%s2730_s2 + $0x1e0] sm:$0xff]  ;;  %v856_v16 = vld [vmem:[%s2730_s2 + $0x1e8] sm:$0xff]  ;;  %v857_v18 = vld [vmem:[%s2730_s2 + $0x1f0] sm:$0xff]  ;;  %2818 = vst [vmem:[#allocation8_spill] sm:$0xff] %v1314_v33  ;;  %v136_v46 = vmul.f32 %v852_v23, %v852_v23  ;;  %v137_v27 = vmul.f32 %v853_v5, %v853_v5  ;;  %v138_v15 = vmul.f32 %v854_v9, %v854_v9  ;;  %v1326_v25 = vadd.f32 %v119_v40, %v1142_v35 }
  0x16   :  { %v858_v28 = vld [vmem:[%s2730_s2 + $0x1f8] sm:$0xff]  ;;  %2819 = vst [vmem:[#allocation9_spill] sm:$0xff] %v1320_v59  ;;  %2820 = vst [vmem:[#allocation10_spill] sm:$0xff] %v1323_v21  ;;  %v139_v47 = vmul.f32 %v855_v24, %v855_v24  ;;  %v140_v48 = vmul.f32 %v856_v16, %v856_v16  ;;  %v141_v29 = vmul.f32 %v857_v18, %v857_v18  ;;  %vm181_vm6 = vcmp.gt.f32.partialorder %v1320_v59, 0.0 }
  0x17   :  { %2821 = vst [vmem:[#allocation11_spill] sm:$0xff] %v1326_v25  ;;  %v142_v33 = vmul.f32 %v858_v28, %v858_v28  ;;  %v1329_v22 = vadd.f32 %v120_v41, %v1144_v36  ;;  %v1332_v60 = vadd.f32 %v121_v53, %v1146_v37  ;;  %v1335_v30 = vadd.f32 %v122_v54, %v1148_v38 }
  0x18   :  { %v1338_v26 = vadd.f32 %v123_v55, %v1159_v42  ;;  %v1341_v31 = vadd.f32 %v124_v62, %v1161_v43  ;;  %v1344_v39 = vadd.f32 %v125_v2, %v1163_v44  ;;  %v1347_v35 = vadd.f32 %v126_v3, %v1165_v45  ;;  %v2847_v41 = vld [vmem:[#allocation4_spill] sm:$0xff] }
  0x19   :  { %2822 = vst [vmem:[#allocation12_spill] sm:$0xff] %v1329_v22  ;;  %2823 = vst [vmem:[#allocation13_spill] sm:$0xff] %v1332_v60  ;;  %v1350_v36 = vadd.f32 %v127_v10, %v1176_v49  ;;  %v1353_v37 = vadd.f32 %v128_v11, %v1178_v50  ;;  %v1356_v38 = vadd.f32 %v129_v12, %v1180_v51  ;;  %vm2741_vm1 = vcmp.gt.f32.partialorder %v2847_v41, 0.0 }
  0x1a   :  { %2824 = vst [vmem:[#allocation14_spill] sm:$0xff] %v1335_v30  ;;  %2825 = vst [vmem:[#allocation15_spill] sm:$0xff] %v1338_v26  ;;  %v1359_v42 = vadd.f32 %v130_v19, %v1182_v52  ;;  %v1362_v43 = vadd.f32 %v131_v4, %v1193_v56  ;;  %v1365_v44 = vadd.f32 %v132_v32, %v1195_v57  ;;  %vm2746_vm7 = vcmp.gt.f32.partialorder %v1323_v21, 0.0 }
  0x1b   :  { %2826 = vst [vmem:[#allocation16_spill] sm:$0xff] %v1341_v31  ;;  %2827 = vst [vmem:[#allocation17_spill] sm:$0xff] %v1344_v39  ;;  %v1368_v45 = vadd.f32 %v133_v20, %v1197_v58  ;;  %v1371_v49 = vadd.f32 %v134_v34, %v1208_v63  ;;  %v1374_v50 = vadd.f32 %v135_v17, %v1210_v0  ;;  %v2844_v0 = vld [vmem:[#allocation2_spill] sm:$0xff]  ;;  %vm185_vm10 = vcmp.gt.f32.partialorder %v1332_v60, 0.0 }
  0x1c   :  { %2828 = vst [vmem:[#allocation18_spill] sm:$0xff] %v1347_v35  ;;  %2829 = vst [vmem:[#allocation19_spill] sm:$0xff] %v1350_v36  ;;  %v1377_v51 = vadd.f32 %v136_v46, %v1212_v1  ;;  %v1380_v52 = vadd.f32 %v137_v27, %v1223_v6  ;;  %v1383_v56 = vadd.f32 %v138_v15, %v1225_v7  ;;  %v2846_v1 = vld [vmem:[#allocation3_spill] sm:$0xff]  ;;  %v2848_v6 = vld [vmem:[#allocation5_spill] sm:$0xff]  ;;  %vm2747_vm11 = vcmp.gt.f32.partialorder %v1335_v30, 0.0 }
  0x1d   :  { %2830 = vst [vmem:[#allocation20_spill] sm:$0xff] %v1353_v37  ;;  %2831 = vst [vmem:[#allocation21_spill] sm:$0xff] %v1356_v38  ;;  %v1386_v57 = vadd.f32 %v139_v47, %v1227_v8  ;;  %v1389_v58 = vadd.f32 %v140_v48, %v1238_v13  ;;  %v1392_v63 = vadd.f32 %v141_v29, %v1240_v14  ;;  %vm2740_vm0 = vcmp.gt.f32.partialorder %v2846_v1, 0.0  ;;  %v2849_v7 = vld [vmem:[#allocation6_spill] sm:$0xff]  ;;  %v2850_v15 = vld [vmem:[#allocation7_spill] sm:$0xff] }
  0x1e   :  { %2832 = vst [vmem:[#allocation22_spill] sm:$0xff] %v1359_v42  ;;  %2833 = vst [vmem:[#allocation23_spill] sm:$0xff] %v1362_v43  ;;  %v1395_v40 = vadd.f32 %v142_v33, %v2844_v0  ;;  %vm2742_vm2 = vcmp.gt.f32.partialorder %v2848_v6, 0.0  ;;  %vm2743_vm3 = vcmp.gt.f32.partialorder %v2849_v7, 0.0  ;;  %vm2744_vm4 = vcmp.gt.f32.partialorder %v2850_v15, 0.0  ;;  %v2851_v8 = vld [vmem:[#allocation8_spill] sm:$0xff] }
  0x1f   :  { %2834 = vst [vmem:[#allocation24_spill] sm:$0xff] %v1365_v44  ;;  %2835 = vst [vmem:[#allocation25_spill] sm:$0xff] %v1368_v45  ;;  %vm2745_vm5 = vcmp.gt.f32.partialorder %v2851_v8, 0.0  ;;  %v207_v13 = vsel %vm2740_vm0, %v2846_v1, 1.0  ;;  %vm190_vm15 = vcmp.gt.f32.partialorder %v1347_v35, 0.0  ;;  %vm192_vm9 = vcmp.gt.f32.partialorder %v1353_v37, 0.0 }
  0x20   :  { %2836 = vst [vmem:[#allocation26_spill] sm:$0xff] %v1371_v49  ;;  %2837 = vst [vmem:[#allocation27_spill] sm:$0xff] %v1374_v50  ;;  %v208_v14 = vsel %vm2741_vm1, %v2847_v41, 1.0  ;;  %vm194_vm13 = vcmp.gt.f32.partialorder %v1359_v42, 0.0  ;;  %vm195_vm14 = vcmp.gt.f32.partialorder %v1362_v43, 0.0  ;;  %v209_v27 = vsel %vm2742_vm2, %v2848_v6, 1.0 }
  0x21   :  { %2838 = vst [vmem:[#allocation28_spill] sm:$0xff] %v1377_v51  ;;  %2839 = vst [vmem:[#allocation29_spill] sm:$0xff] %v1380_v52  ;;  %v210_v46 = vsel %vm2743_vm3, %v2849_v7, 1.0  ;;  %891 = vrsqrt.f32 %v207_v13  ;;  %vm199_vm12 = vcmp.gt.f32.partialorder %v1374_v50, 0.0  ;;  %v211_v53 = vsel %vm2744_vm4, %v2850_v15, 1.0 }
  0x22   :  { %2840 = vst [vmem:[#allocation30_spill] sm:$0xff] %v1383_v56  ;;  %2841 = vst [vmem:[#allocation31_spill] sm:$0xff] %v1386_v57  ;;  %893 = vrsqrt.f32 %v208_v14  ;;  %vm201_vm0 = vcmp.gt.f32.partialorder %v1380_v52, 0.0  ;;  %v212_v54 = vsel %vm2745_vm5, %v2851_v8, 1.0  ;;  %vm202_vm8 = vcmp.gt.f32.partialorder %v1383_v56, 0.0 }
  0x23   :  { %2842 = vst [vmem:[#allocation32_spill] sm:$0xff] %v1389_v58  ;;  %2843 = vst [vmem:[#allocation33_spill] sm:$0xff] %v1392_v63  ;;  %895 = vrsqrt.f32 %v209_v27  ;;  %v213_v55 = vsel %vm181_vm6, %v1320_v59, 1.0  ;;  %vm204_vm4 = vcmp.gt.f32.partialorder %v1389_v58, 0.0  ;;  %vm2811_vm2 = vcmp.gt.f32.partialorder %v1392_v63, 0.0 }
  0x24   :  { %2845 = vst [vmem:[#allocation2_spill] sm:$0xff] %v1395_v40  ;;  %897 = vrsqrt.f32 %v210_v46  ;;  %v214_v61 = vsel %vm2746_vm7, %v1323_v21, 1.0  ;;  %vm2806_vm5 = vcmp.gt.f32.partialorder %v1395_v40, 0.0  ;;  %vm2852_vm3 = vcmp.gt.f32.partialorder %v1326_v25, 0.0 }
  0x25   :  { %899 = vrsqrt.f32 %v211_v53  ;;  %v215_v62 = vsel %vm2852_vm3, %v1326_v25, 1.0  ;;  %vm2853_vm1 = vcmp.gt.f32.partialorder %v1329_v22, 0.0  ;;  %v217_v3 = vsel %vm185_vm10, %v1332_v60, 1.0 }
  0x26   :  { %v216_v2 = vsel %vm2853_vm1, %v1329_v22, 1.0  ;;  %901 = vrsqrt.f32 %v212_v54  ;;  %v218_v4 = vsel %vm2747_vm11, %v1335_v30, 1.0  ;;  %vm2854_vm7 = vcmp.gt.f32.partialorder %v1338_v26, 0.0 }
  0x27   :  { %v219_v23 = vsel %vm2854_vm7, %v1338_v26, 1.0  ;;  %903 = vrsqrt.f32 %v213_v55  ;;  %vm2855_vm3 = vcmp.gt.f32.partialorder %v1341_v31, 0.0  ;;  %vm2856_vm1 = vcmp.gt.f32.partialorder %v1344_v39, 0.0 }
  0x28   :  { %v220_v5 = vsel %vm2855_vm3, %v1341_v31, 1.0  ;;  %v221_v9 = vsel %vm2856_vm1, %v1344_v39, 1.0  ;;  %v222_v10 = vsel %vm190_vm15, %v1347_v35, 1.0  ;;  %905 = vrsqrt.f32 %v214_v61 }
  0x29   :  { %vm2857_vm11 = vcmp.gt.f32.partialorder %v1350_v36, 0.0  ;;  %v224_v12 = vsel %vm192_vm9, %v1353_v37, 1.0  ;;  %vm2858_vm7 = vcmp.gt.f32.partialorder %v1356_v38, 0.0  ;;  %907 = vrsqrt.f32 %v215_v62 }
  0x2a   :  { %v223_v11 = vsel %vm2857_vm11, %v1350_v36, 1.0  ;;  %v225_v17 = vsel %vm2858_vm7, %v1356_v38, 1.0  ;;  %v226_v24 = vsel %vm194_vm13, %v1359_v42, 1.0  ;;  %v227_v16 = vsel %vm195_vm14, %v1362_v43, 1.0 }
  0x2b   :  { %vm2859_vm11 = vcmp.gt.f32.partialorder %v1365_v44, 0.0  ;;  %909 = vrsqrt.f32 %v216_v2  ;;  %v1495_v19 = vpop.eup %891  ;;  %vm2860_vm3 = vcmp.gt.f32.partialorder %v1368_v45, 0.0  ;;  %vm2861_vm1 = vcmp.gt.f32.partialorder %v1371_v49, 0.0 }
  0x2c   :  { %v228_v18 = vsel %vm2859_vm11, %v1365_v44, 1.0  ;;  %v229_v32 = vsel %vm2860_vm3, %v1368_v45, 1.0  ;;  %v1503_v33 = vsel %vm2861_vm1, %v1371_v49, 1.0  ;;  %v1508_v28 = vsel %vm199_vm12, %v1374_v50, 1.0  ;;  %v1510_v20 = vpop.eup %893 }
  0x2d   :  { %911 = vrsqrt.f32 %v217_v3  ;;  %vm2862_vm7 = vcmp.gt.f32.partialorder %v1377_v51, 0.0  ;;  %v1520_v47 = vsel %vm201_vm0, %v1380_v52, 1.0  ;;  %v1524_v48 = vmul.f32 %v1495_v19, %v2846_v1  ;;  %v1526_v29 = vpop.eup %895 }
  0x2e   :  { %v1515_v34 = vsel %vm2862_vm7, %v1377_v51, 1.0  ;;  %913 = vrsqrt.f32 %v218_v4  ;;  %v1531_v0 = vsel %vm202_vm8, %v1383_v56, 1.0  ;;  %vm2863_vm11 = vcmp.gt.f32.partialorder %v1386_v57, 0.0  ;;  %v1542_v27 = vpop.eup %897 }
  0x2f   :  { %v1536_v13 = vsel %vm2863_vm11, %v1386_v57, 1.0  ;;  %915 = vrsqrt.f32 %v219_v23  ;;  %v1540_v14 = vmul.f32 %v1510_v20, %v2847_v41  ;;  %v1547_v46 = vsel %vm204_vm4, %v1389_v58, 1.0  ;;  %v1555_v55 = vpop.eup %899 }
  0x30   :  { %917 = vrsqrt.f32 %v220_v5  ;;  %v1551_v53 = vmul.f32 %v1526_v29, %v2848_v6  ;;  %vm2864_vm3 = vcmask 64512   ;;  %2865 = vst [vmem:[#allocation34_spill] sm:$0xff] %v1555_v55  ;;  %v1560_v61 = vsel %vm2811_vm2, %v1392_v63, 1.0  ;;  %v1568_v3 = vpop.eup %901 }
  0x31   :  { %v304_v54 = vsel %vm2864_vm3, %v1524_v48, 0.0  ;;  %919 = vrsqrt.f32 %v221_v9  ;;  %v1564_v62 = vmul.f32 %v1542_v27, %v2849_v7  ;;  %vm2866_vm1 = vmmov %vm2864_vm3  ;;  %v1573_v4 = vsel %vm2806_vm5, %v1395_v40, 1.0  ;;  %v1581_v9 = vpop.eup %903 }
  0x32   :  { %v335_v2 = vsel %vm2866_vm1, %v1540_v14, 0.0  ;;  %921 = vrsqrt.f32 %v222_v10  ;;  %v1577_v23 = vmul.f32 %v1555_v55, %v2850_v15  ;;  %vm2867_vm7 = vmmov %vm2866_vm1  ;;  %v1585_v7 = vmul.f32 %v1568_v3, %v2851_v8  ;;  %v1589_v1 = vpop.eup %905 }
  0x33   :  { %v305_v5 = vsel %vm2867_vm7, %v1551_v53, 0.0  ;;  %923 = vrsqrt.f32 %v223_v11  ;;  %vm2868_vm11 = vmmov %vm2866_vm1  ;;  %v1593_v10 = vmul.f32 %v1581_v9, %v1320_v59  ;;  %v1597_v11 = vpop.eup %907 }
  0x34   :  { %v306_v6 = vadd.f32 %v305_v5, %v304_v54  ;;  %v336_v41 = vsel %vm2868_vm11, %v1564_v62, 0.0  ;;  %925 = vrsqrt.f32 %v224_v12  ;;  %vm2869_vm3 = vmmov %vm2866_vm1  ;;  %2870 = vst [vmem:[#allocation35_spill] sm:$0xff] %v1597_v11  ;;  %v1601_v54 = vmul.f32 %v1589_v1, %v1323_v21 }
  0x35   :  { %v307_v15 = vsel %vm2869_vm3, %v1577_v23, 0.0  ;;  %v337_v55 = vadd.f32 %v336_v41, %v335_v2  ;;  %927 = vrsqrt.f32 %v225_v17  ;;  %v338_v8 = vsel %vm2866_vm1, %v1585_v7, 0.0  ;;  %v1605_v12 = vpop.eup %909  ;;  %vm2872_vm7 = vmmov %vm2866_vm1 }
  0x36   :  { %v308_v5 = vadd.f32 %v307_v15, %v306_v6  ;;  %2871 = vst [vmem:[#allocation36_spill] sm:$0xff] %v1605_v12  ;;  %929 = vrsqrt.f32 %v226_v24  ;;  %v1609_v59 = vmul.f32 %v1597_v11, %v1326_v25  ;;  %v309_v41 = vsel %vm2872_vm7, %v1593_v10, 0.0  ;;  %vm2874_vm11 = vmmov %vm2866_vm1 }
  0x37   :  { %v339_v2 = vadd.f32 %v338_v8, %v337_v55  ;;  %v1613_v17 = vpop.eup %911  ;;  %931 = vrsqrt.f32 %v227_v16  ;;  %v1617_v6 = vmul.f32 %v1605_v12, %v1329_v22  ;;  %v340_v21 = vsel %vm2874_vm11, %v1601_v54, 0.0  ;;  %vm2877_vm3 = vmmov %vm2866_vm1 }
  0x38   :  { %2873 = vst [vmem:[#allocation37_spill] sm:$0xff] %v1613_v17  ;;  %v310_v15 = vadd.f32 %v309_v41, %v308_v5  ;;  %v1621_v24 = vpop.eup %913  ;;  %933 = vrsqrt.f32 %v228_v18  ;;  %v1625_v25 = vmul.f32 %v1613_v17, %v1332_v60  ;;  %v311_v8 = vsel %vm2877_vm3, %v1609_v59, 0.0  ;;  %vm2882_vm7 = vmmov %vm2866_vm1 }
  0x39   :  { %2875 = vst [vmem:[#allocation38_spill] sm:$0xff] %v1621_v24  ;;  %v341_v55 = vadd.f32 %v340_v21, %v339_v2  ;;  %v1629_v16 = vpop.eup %915  ;;  %935 = vrsqrt.f32 %v229_v32  ;;  %v1633_v5 = vmul.f32 %v1621_v24, %v1335_v30  ;;  %v342_v22 = vsel %vm2866_vm1, %v1617_v6, 0.0  ;;  %vm2885_vm11 = vmmov %vm2866_vm1 }
  0x3a   :  { %2876 = vst [vmem:[#allocation39_spill] sm:$0xff] %v1625_v25  ;;  %2878 = vst [vmem:[#allocation40_spill] sm:$0xff] %v1629_v16  ;;  %v312_v41 = vadd.f32 %v311_v8, %v310_v15  ;;  %v1637_v18 = vpop.eup %917  ;;  %937 = vrsqrt.f32 %v1503_v33  ;;  %v1642_v60 = vmul.f32 %v1629_v16, %v1338_v26  ;;  %v313_v21 = vsel %vm2882_vm7, %v1625_v25, 0.0 }
  0x3b   :  { %2879 = vst [vmem:[#allocation41_spill] sm:$0xff] %v1633_v5  ;;  %2880 = vst [vmem:[#allocation42_spill] sm:$0xff] %v1637_v18  ;;  %v343_v32 = vadd.f32 %v342_v22, %v341_v55  ;;  %v1646_v2 = vpop.eup %919  ;;  %939 = vrsqrt.f32 %v1508_v28  ;;  %v1651_v15 = vmul.f32 %v1637_v18, %v1341_v31  ;;  %v344_v33 = vsel %vm2885_vm11, %v1633_v5, 0.0 }
  0x3c   :  { %2881 = vst [vmem:[#allocation43_spill] sm:$0xff] %v1642_v60  ;;  %2883 = vst [vmem:[#allocation44_spill] sm:$0xff] %v1646_v2  ;;  %v314_v8 = vadd.f32 %v313_v21, %v312_v41  ;;  %v1655_v30 = vpop.eup %921  ;;  %941 = vrsqrt.f32 %v1515_v34  ;;  %v1660_v26 = vmul.f32 %v1646_v2, %v1344_v39 }
  0x3d   :  { %2884 = vst [vmem:[#allocation45_spill] sm:$0xff] %v1651_v15  ;;  %2886 = vst [vmem:[#allocation46_spill] sm:$0xff] %v1655_v30  ;;  %v345_v28 = vadd.f32 %v344_v33, %v343_v32  ;;  %v1664_v55 = vpop.eup %923  ;;  %943 = vrsqrt.f32 %v1520_v47  ;;  %v1669_v41 = vmul.f32 %v1655_v30, %v1347_v35  ;;  %v346_v34 = vsel %vm2866_vm1, %v1651_v15, 0.0 }
  0x3e   :  { %2887 = vst [vmem:[#allocation47_spill] sm:$0xff] %v1660_v26  ;;  %vm2888_vm3 = vmmov %vm2866_vm1  ;;  %v1673_v31 = vpop.eup %925  ;;  %945 = vrsqrt.f32 %v1531_v0  ;;  %v1678_v39 = vmul.f32 %v1664_v55, %v1350_v36 }
  0x3f   :  { %v315_v22 = vsel %vm2888_vm3, %v1642_v60, 0.0  ;;  %2889 = vst [vmem:[#allocation48_spill] sm:$0xff] %v1664_v55  ;;  %2890 = vst [vmem:[#allocation49_spill] sm:$0xff] %v1673_v31  ;;  %v347_v47 = vadd.f32 %v346_v34, %v345_v28  ;;  %v1682_v33 = vpop.eup %927  ;;  %947 = vrsqrt.f32 %v1536_v13 }
  0x40   :  { %v316_v21 = vadd.f32 %v315_v22, %v314_v8  ;;  %vm2891_vm7 = vmmov %vm2866_vm1  ;;  %2892 = vst [vmem:[#allocation50_spill] sm:$0xff] %v1682_v33  ;;  %v1687_v8 = vmul.f32 %v1673_v31, %v1353_v37  ;;  %v1691_v35 = vpop.eup %929  ;;  %949 = vrsqrt.f32 %v1547_v46  ;;  %v1696_v36 = vmul.f32 %v1682_v33, %v1356_v38 }
  0x41   :  { %v317_v32 = vsel %vm2891_vm7, %v1660_v26, 0.0  ;;  %vm2893_vm11 = vmmov %vm2866_vm1  ;;  %2894 = vst [vmem:[#allocation51_spill] sm:$0xff] %v1691_v35  ;;  %v1700_v34 = vpop.eup %931  ;;  %951 = vrsqrt.f32 %v1560_v61 }
  0x42   :  { %v318_v22 = vadd.f32 %v317_v32, %v316_v21  ;;  %v348_v0 = vsel %vm2893_vm11, %v1669_v41, 0.0  ;;  %vm2895_vm3 = vmmov %vm2866_vm1  ;;  %2896 = vst [vmem:[#allocation52_spill] sm:$0xff] %v1700_v34  ;;  %v1705_v21 = vmul.f32 %v1691_v35, %v1359_v42  ;;  %v350_v46 = vsel %vm2866_vm1, %v1687_v8, 0.0  ;;  %v1709_v37 = vpop.eup %933 }
  0x43   :  { %v319_v28 = vsel %vm2895_vm3, %v1678_v39, 0.0  ;;  %v349_v13 = vadd.f32 %v348_v0, %v347_v47  ;;  %2897 = vst [vmem:[#allocation53_spill] sm:$0xff] %v1709_v37  ;;  %v1713_v38 = vmul.f32 %v1700_v34, %v1362_v43  ;;  %vm2898_vm7 = vmmov %vm2866_vm1  ;;  %v1717_v33 = vpop.eup %935  ;;  %v1721_v61 = vmul.f32 %v1709_v37, %v1365_v44 }
  0x44   :  { %v320_v32 = vadd.f32 %v319_v28, %v318_v22  ;;  %v321_v47 = vsel %vm2898_vm7, %v1696_v36, 0.0  ;;  %2899 = vst [vmem:[#allocation54_spill] sm:$0xff] %v1717_v33  ;;  %vm2900_vm11 = vmmov %vm2866_vm1  ;;  %v1725_v42 = vpop.eup %937  ;;  %953 = vrsqrt.f32 %v1573_v4  ;;  %v1730_v43 = vmul.f32 %v1717_v33, %v1368_v45 }
  0x45   :  { %v351_v0 = vadd.f32 %v350_v46, %v349_v13  ;;  %v352_v28 = vsel %vm2900_vm11, %v1705_v21, 0.0  ;;  %2901 = vst [vmem:[#allocation55_spill] sm:$0xff] %v1725_v42  ;;  %vm2902_vm3 = vmmov %vm2866_vm1  ;;  %v1734_v34 = vpop.eup %939  ;;  %v354_v44 = vsel %vm2866_vm1, %v1721_v61, 0.0 }
  0x46   :  { %v322_v22 = vadd.f32 %v321_v47, %v320_v32  ;;  %v323_v13 = vsel %vm2902_vm3, %v1713_v38, 0.0  ;;  %2903 = vst [vmem:[#allocation56_spill] sm:$0xff] %v1734_v34  ;;  %v1738_v32 = vmul.f32 %v1725_v42, %v1371_v49  ;;  %v1742_v37 = vpop.eup %941  ;;  %v1746_v4 = vmul.f32 %v1734_v34, %v1374_v50  ;;  %vm2905_vm7 = vmmov %vm2866_vm1 }
  0x47   :  { %v353_v46 = vadd.f32 %v352_v28, %v351_v0  ;;  %2904 = vst [vmem:[#allocation57_spill] sm:$0xff] %v1742_v37  ;;  %v325_v45 = vsel %vm2905_vm7, %v1730_v43, 0.0  ;;  %v1750_v28 = vpop.eup %943  ;;  %v1754_v49 = vmul.f32 %v1742_v37, %v1377_v51  ;;  %vm2907_vm11 = vmmov %vm2866_vm1 }
  0x48   :  { %v324_v47 = vadd.f32 %v323_v13, %v322_v22  ;;  %2906 = vst [vmem:[#allocation58_spill] sm:$0xff] %v1750_v28  ;;  %v356_v13 = vsel %vm2907_vm11, %v1738_v32, 0.0  ;;  %v1758_v42 = vpop.eup %945  ;;  %v1762_v50 = vmul.f32 %v1750_v28, %v1380_v52  ;;  %vm2909_vm3 = vmmov %vm2866_vm1 }
  0x49   :  { %v355_v0 = vadd.f32 %v354_v44, %v353_v46  ;;  %2908 = vst [vmem:[#allocation59_spill] sm:$0xff] %v1758_v42  ;;  %v327_v34 = vsel %vm2909_vm3, %v1746_v4, 0.0  ;;  %v1766_v46 = vpop.eup %947  ;;  %v1770_v51 = vmul.f32 %v1758_v42, %v1383_v56  ;;  %vm2912_vm7 = vmmov %vm2866_vm1 }
  0x4a   :  { %v326_v22 = vadd.f32 %v325_v45, %v324_v47  ;;  %2910 = vst [vmem:[#allocation60_spill] sm:$0xff] %v1766_v46  ;;  %v358_v47 = vsel %vm2866_vm1, %v1754_v49, 0.0  ;;  %v1774_v37 = vpop.eup %949  ;;  %v1778_v52 = vmul.f32 %v1766_v46, %v1386_v57  ;;  %v329_v28 = vsel %vm2912_vm7, %v1762_v50, 0.0  ;;  %vm2914_vm11 = vmmov %vm2866_vm1 }
  0x4b   :  { %v357_v44 = vadd.f32 %v356_v13, %v355_v0  ;;  %2911 = vst [vmem:[#allocation61_spill] sm:$0xff] %v1774_v37  ;;  %v1782_v0 = vpop.eup %951  ;;  %v1786_v56 = vmul.f32 %v1774_v37, %v1389_v58  ;;  %vm2916_vm3 = vmmov %vm2866_vm1 }
  0x4c   :  { %v328_v45 = vadd.f32 %v327_v34, %v326_v22  ;;  %2913 = vst [vmem:[#allocation62_spill] sm:$0xff] %v1782_v0  ;;  %v360_v22 = vsel %vm2914_vm11, %v1770_v51, 0.0  ;;  %v1794_v57 = vmul.f32 %v1782_v0, %v1392_v63  ;;  %v331_v46 = vsel %vm2916_vm3, %v1778_v52, 0.0  ;;  %vm2917_vm7 = vmmov %vm2866_vm1 }
  0x4d   :  { %v359_v13 = vadd.f32 %v358_v47, %v357_v44  ;;  %vm2918_vm11 = vmmov %vm2866_vm1 }
  0x4e   :  { %v330_v34 = vadd.f32 %v329_v28, %v328_v45  ;;  %v1790_v42 = vpop.eup %953  ;;  %v362_v28 = vsel %vm2866_vm1, %v1786_v56, 0.0  ;;  %v333_v45 = vsel %vm2917_vm7, %v1794_v57, 0.0  ;;  %vm2919_vm3 = vmmov %vm2866_vm1 }
  0x4f   :  { %2915 = vst [vmem:[#allocation63_spill] sm:$0xff] %v1790_v42  ;;  %v361_v33 = vadd.f32 %v360_v22, %v359_v13  ;;  %v1800_v44 = vmul.f32 %v1790_v42, %v1395_v40  ;;  %vm2920_vm7 = vmmov %vm2866_vm1 }
  0x50   :  { %v332_v47 = vadd.f32 %v331_v46, %v330_v34  ;;  %vm2923_vm5 = vmmov %vm2866_vm1 }
  0x51   :  { %v363_v58 = vadd.f32 %v362_v28, %v361_v33  ;;  %v364_v63 = vsel %vm2918_vm11, %v1800_v44, 0.0  ;;  %vm2921_vm11 = vmmov %vm2866_vm1 }
  0x52   :  { %v334_v37 = vadd.f32 %v333_v45, %v332_v47  ;;  %vm2944_vm2 = vmmov %vm2866_vm1 }
  0x53   :  { %v365_v0 = vadd.f32 %v364_v63, %v363_v58 }
  0x54   :  { %v1808_v35 = vmul.f32 0.0625, %v334_v37  ;;  %v1831_v30 = vsel %vm2919_vm3, %v334_v37, 0.0  ;;  %vm2922_vm3 = vmmov %vm2866_vm1 }
  0x55   :  { %v1810_v13 = vmul.f32 0.0625, %v365_v0  ;;  %v1843_v11 = vsel %vm2922_vm3, %v365_v0, 0.0  ;;  %vm2927_vm3 = vmmov %vm2866_vm1 }
  0x56   :  { %v380_v22 = vsub.f32 %v1524_v48, %v1808_v35  ;;  %v382_v46 = vsub.f32 %v1551_v53, %v1808_v35  ;;  %v384_v34 = vsub.f32 %v1577_v23, %v1808_v35  ;;  %v386_v33 = vsub.f32 %v1593_v10, %v1808_v35 }
  0x57   :  { %v381_v47 = vsub.f32 %v1540_v14, %v1810_v13  ;;  %v388_v58 = vsub.f32 %v1609_v59, %v1808_v35  ;;  %v383_v40 = vsub.f32 %v1564_v62, %v1810_v13  ;;  %v385_v42 = vsub.f32 %v1585_v7, %v1810_v13 }
  0x58   :  { %v412_v63 = vmul.f32 %v380_v22, %v380_v22  ;;  %v414_v28 = vmul.f32 %v382_v46, %v382_v46  ;;  %v416_v45 = vmul.f32 %v384_v34, %v384_v34  ;;  %v390_v31 = vsub.f32 %v1625_v25, %v1808_v35 }
  0x59   :  { %v418_v55 = vmul.f32 %v386_v33, %v386_v33  ;;  %v387_v2 = vsub.f32 %v1601_v54, %v1810_v13  ;;  %v392_v22 = vsub.f32 %v1642_v60, %v1808_v35  ;;  %v413_v46 = vmul.f32 %v381_v47, %v381_v47 }
  0x5a   :  { %v420_v34 = vmul.f32 %v388_v58, %v388_v58  ;;  %v444_v18 = vsel %vm2866_vm1, %v412_v63, 0.0  ;;  %v445_v16 = vsel %vm2920_vm7, %v414_v28, 0.0  ;;  %v447_v24 = vsel %vm2921_vm11, %v416_v45, 0.0  ;;  %vm2924_vm7 = vmmov %vm2866_vm1 }
  0x5b   :  { %v389_v33 = vsub.f32 %v1617_v6, %v1810_v13  ;;  %v415_v17 = vmul.f32 %v383_v40, %v383_v40  ;;  %v417_v37 = vmul.f32 %v385_v42, %v385_v42  ;;  %v446_v12 = vadd.f32 %v445_v16, %v444_v18  ;;  %vm2925_vm11 = vmmov %vm2866_vm1 }
  0x5c   :  { %v394_v60 = vsub.f32 %v1660_v26, %v1808_v35  ;;  %v422_v47 = vmul.f32 %v390_v31, %v390_v31  ;;  %v449_v58 = vsel %vm2923_vm5, %v418_v55, 0.0  ;;  %v391_v63 = vsub.f32 %v1633_v5, %v1810_v13  ;;  %vm2926_vm5 = vmmov %vm2866_vm1 }
  0x5d   :  { %v393_v28 = vsub.f32 %v1651_v15, %v1810_v13  ;;  %v419_v45 = vmul.f32 %v387_v2, %v387_v2  ;;  %v448_v25 = vadd.f32 %v447_v24, %v446_v12  ;;  %v396_v42 = vsub.f32 %v1678_v39, %v1808_v35 }
  0x5e   :  { %v424_v40 = vmul.f32 %v392_v22, %v392_v22  ;;  %v451_v16 = vsel %vm2866_vm1, %v420_v34, 0.0  ;;  %v475_v18 = vsel %vm2924_vm7, %v413_v46, 0.0  ;;  %v421_v0 = vmul.f32 %v389_v33, %v389_v33  ;;  %vm2928_vm7 = vmmov %vm2866_vm1 }
  0x5f   :  { %v450_v31 = vadd.f32 %v449_v58, %v448_v25  ;;  %v476_v55 = vsel %vm2925_vm11, %v415_v17, 0.0  ;;  %v478_v26 = vsel %vm2926_vm5, %v417_v37, 0.0  ;;  %v398_v5 = vsub.f32 %v1696_v36, %v1808_v35  ;;  %vm2929_vm11 = vmmov %vm2866_vm1 }
  0x60   :  { %v426_v15 = vmul.f32 %v394_v60, %v394_v60  ;;  %v453_v12 = vsel %vm2927_vm3, %v422_v47, 0.0  ;;  %v477_v24 = vadd.f32 %v476_v55, %v475_v18  ;;  %v395_v2 = vsub.f32 %v1669_v41, %v1810_v13  ;;  %vm2930_vm5 = vmmov %vm2866_vm1 }
  0x61   :  { %v423_v22 = vmul.f32 %v391_v63, %v391_v63  ;;  %v452_v34 = vadd.f32 %v451_v16, %v450_v31  ;;  %v480_v46 = vsel %vm2866_vm1, %v419_v45, 0.0  ;;  %v400_v25 = vsub.f32 %v1713_v38, %v1808_v35  ;;  %vm2931_vm3 = vmmov %vm2866_vm1 }
  0x62   :  { %v428_v17 = vmul.f32 %v396_v42, %v396_v42  ;;  %v455_v33 = vsel %vm2928_vm7, %v424_v40, 0.0  ;;  %v479_v37 = vadd.f32 %v478_v26, %v477_v24  ;;  %v397_v60 = vsub.f32 %v1687_v8, %v1810_v13  ;;  %vm2932_vm7 = vmmov %vm2866_vm1 }
  0x63   :  { %v425_v58 = vmul.f32 %v393_v28, %v393_v28  ;;  %v454_v47 = vadd.f32 %v453_v12, %v452_v34  ;;  %v482_v18 = vsel %vm2929_vm11, %v421_v0, 0.0  ;;  %v402_v63 = vsub.f32 %v1730_v43, %v1808_v35  ;;  %vm2933_vm11 = vmmov %vm2866_vm1 }
  0x64   :  { %v430_v16 = vmul.f32 %v398_v5, %v398_v5  ;;  %v457_v45 = vsel %vm2930_vm5, %v426_v15, 0.0  ;;  %v481_v31 = vadd.f32 %v480_v46, %v479_v37  ;;  %v399_v42 = vsub.f32 %v1705_v21, %v1810_v13  ;;  %vm2934_vm5 = vmmov %vm2866_vm1 }
  0x65   :  { %v427_v55 = vmul.f32 %v395_v2, %v395_v2  ;;  %v456_v40 = vadd.f32 %v455_v33, %v454_v47  ;;  %v484_v26 = vsel %vm2931_vm3, %v423_v22, 0.0  ;;  %v404_v28 = vsub.f32 %v1746_v4, %v1808_v35  ;;  %vm2935_vm3 = vmmov %vm2866_vm1 }
  0x66   :  { %v432_v12 = vmul.f32 %v400_v25, %v400_v25  ;;  %v459_v0 = vsel %vm2866_vm1, %v428_v17, 0.0  ;;  %v483_v24 = vadd.f32 %v482_v18, %v481_v31  ;;  %v401_v5 = vsub.f32 %v1721_v61, %v1810_v13 }
  0x67   :  { %v429_v34 = vmul.f32 %v397_v60, %v397_v60  ;;  %v458_v15 = vadd.f32 %v457_v45, %v456_v40  ;;  %v486_v46 = vsel %vm2932_vm7, %v425_v58, 0.0  ;;  %v406_v2 = vsub.f32 %v1762_v50, %v1808_v35  ;;  %vm2936_vm7 = vmmov %vm2866_vm1 }
  0x68   :  { %v434_v33 = vmul.f32 %v402_v63, %v402_v63  ;;  %v461_v22 = vsel %vm2933_vm11, %v430_v16, 0.0  ;;  %v485_v37 = vadd.f32 %v484_v26, %v483_v24  ;;  %v403_v25 = vsub.f32 %v1738_v32, %v1810_v13  ;;  %vm2937_vm11 = vmmov %vm2866_vm1 }
  0x69   :  { %v431_v47 = vmul.f32 %v399_v42, %v399_v42  ;;  %v460_v17 = vadd.f32 %v459_v0, %v458_v15  ;;  %v488_v18 = vsel %vm2934_vm5, %v427_v55, 0.0  ;;  %v408_v60 = vsub.f32 %v1778_v52, %v1808_v35  ;;  %vm2938_vm5 = vmmov %vm2866_vm1 }
  0x6a   :  { %v436_v45 = vmul.f32 %v404_v28, %v404_v28  ;;  %v463_v58 = vsel %vm2935_vm3, %v432_v12, 0.0  ;;  %v487_v31 = vadd.f32 %v486_v46, %v485_v37  ;;  %v405_v63 = vsub.f32 %v1754_v49, %v1810_v13  ;;  %vm2939_vm3 = vmmov %vm2866_vm1 }
  0x6b   :  { %v433_v40 = vmul.f32 %v401_v5, %v401_v5  ;;  %v462_v16 = vadd.f32 %v461_v22, %v460_v17  ;;  %v490_v26 = vsel %vm2866_vm1, %v429_v34, 0.0  ;;  %v410_v42 = vsub.f32 %v1794_v57, %v1808_v35 }
  0x6c   :  { %v438_v0 = vmul.f32 %v406_v2, %v406_v2  ;;  %v465_v55 = vsel %vm2936_vm7, %v434_v33, 0.0  ;;  %v489_v24 = vadd.f32 %v488_v18, %v487_v31  ;;  %v407_v28 = vsub.f32 %v1770_v51, %v1810_v13  ;;  %vm2940_vm7 = vmmov %vm2866_vm1 }
  0x6d   :  { %v435_v15 = vmul.f32 %v403_v25, %v403_v25  ;;  %v464_v12 = vadd.f32 %v463_v58, %v462_v16  ;;  %v492_v46 = vsel %vm2937_vm11, %v431_v47, 0.0  ;;  %v440_v37 = vmul.f32 %v408_v60, %v408_v60  ;;  %vm2941_vm11 = vmmov %vm2866_vm1 }
  0x6e   :  { %v467_v5 = vsel %vm2938_vm5, %v436_v45, 0.0  ;;  %v491_v22 = vadd.f32 %v490_v26, %v489_v24  ;;  %v409_v34 = vsub.f32 %v1786_v56, %v1810_v13  ;;  %v437_v17 = vmul.f32 %v405_v63, %v405_v63  ;;  %vm2942_vm5 = vmmov %vm2866_vm1 }
  0x6f   :  { %v466_v35 = vadd.f32 %v465_v55, %v464_v12  ;;  %v494_v2 = vsel %vm2939_vm3, %v433_v40, 0.0  ;;  %v370_v33 = vadd.f32 %v1843_v11, %v1831_v30  ;;  %v442_v18 = vmul.f32 %v410_v42, %v410_v42  ;;  %vm2943_vm3 = vmmov %vm2866_vm1 }
  0x70   :  { %v469_v25 = vsel %vm2866_vm1, %v438_v0, 0.0  ;;  %v493_v58 = vadd.f32 %v492_v46, %v491_v22  ;;  %v411_v47 = vsub.f32 %v1800_v44, %v1810_v13  ;;  %v439_v60 = vmul.f32 %v407_v28, %v407_v28 }
  0x71   :  { %v468_v45 = vadd.f32 %v467_v5, %v466_v35  ;;  %v496_v31 = vsel %vm2940_vm7, %v435_v15, 0.0  ;;  %v471_v16 = vsel %vm2941_vm11, %v440_v37, 0.0  ;;  %v441_v26 = vmul.f32 %v409_v34, %v409_v34  ;;  %vm2945_vm7 = vmmov %vm2866_vm1 }
  0x72   :  { %v495_v63 = vadd.f32 %v494_v2, %v493_v58  ;;  %v498_v40 = vsel %vm2942_vm5, %v437_v17, 0.0  ;;  %v473_v30 = vsel %vm2943_vm3, %v442_v18, 0.0  ;;  %v371_v42 = vrot.slane %v370_v33, 4  ;;  %vm2946_vm11 = vmmov %vm2866_vm1 }
  0x73   :  { %v470_v55 = vadd.f32 %v469_v25, %v468_v45  ;;  %v443_v0 = vmul.f32 %v411_v47, %v411_v47  ;;  %v500_v12 = vsel %vm2866_vm1, %v439_v60, 0.0  ;;  %v502_v46 = vsel %vm2944_vm2, %v441_v26, 0.0  ;;  %vm2947_vm5 = vmmov %vm2866_vm1 }
  0x74   :  { %v497_v11 = vadd.f32 %v496_v31, %v495_v63  ;;  %v372_v5 = vadd.f32 %v371_v42, %v370_v33  ;;  %vm2948_vm2 = vmmov %vm2866_vm1 }
  0x75   :  { %v472_v24 = vadd.f32 %v471_v16, %v470_v55  ;;  %v504_v37 = vsel %vm2945_vm7, %v443_v0, 0.0  ;;  %vm2949_vm3 = vmmov %vm2866_vm1 }
  0x76   :  { %v499_v13 = vadd.f32 %v498_v40, %v497_v11  ;;  %v373_v17 = vrot.slane %v372_v5, 2 }
  0x77   :  { %v474_v28 = vadd.f32 %v473_v30, %v472_v24 }
  0x78   :  { %v501_v15 = vadd.f32 %v500_v12, %v499_v13  ;;  %v374_v58 = vadd.f32 %v373_v17, %v372_v5 }
  0x79   :  { %v506_v34 = vmul.f32 0.06666667, %v474_v28 }
  0x7a   :  { %v503_v22 = vadd.f32 %v502_v46, %v501_v15  ;;  %v375_v45 = vrot.slane %v374_v58, 1 }
  0x7b   :  { %v508_v18 = vsel %vm2946_vm11, %v506_v34, 0.0 }
  0x7c   :  { %v505_v35 = vadd.f32 %v504_v37, %v503_v22  ;;  %v376_v63 = vadd.f32 %v375_v45, %v374_v58 }
  0x7e   :  { %v507_v2 = vmul.f32 0.06666667, %v505_v35  ;;  %v377_v55 = vmul.f32 0.00390625, %v376_v63 }
  0x80   :  { %v509_v25 = vsel %vm2947_vm5, %v507_v2, 0.0  ;;  %955 = vrcp.f32 %v377_v55  ;;  %v555_v55 = vlaneseq }
  0x81   :  { %v510_v47 = vadd.f32 %v509_v25, %v508_v18 }
  0x83   :  { %v511_v60 = vrot.slane %v510_v47, 4 }
  0x85   :  { %v512_v31 = vadd.f32 %v511_v60, %v510_v47 }
  0x87   :  { %v513_v16 = vrot.slane %v512_v31, 2 }
  0x89   :  { %v514_v26 = vadd.f32 %v513_v16, %v512_v31  ;;  %v536_v16 = vld [vmem:[%s2731_s0] sm:$0x1] }
  0x8a   :  { %v956_v5 = vpop.eup %955 }
  0x8b   :  { %v515_v33 = vrot.slane %v514_v26, 1  ;;  %v379_v22 = vmul.f32 1.4142135, %v956_v5 }
  0x8d   :  { %v516_v40 = vadd.f32 %v515_v33, %v514_v26  ;;  %v533_v25 = vmul.f32 %v379_v22, %v379_v22 }
  0x8f   :  { %v518_v30 = vmul.f32 0.0625, %v516_v40  ;;  %v537_v40 = vld [vmem:[%s2732_s1] sm:$0x1] }
  0x91   :  { %v519_v11 = vsub.f32 %v506_v34, %v518_v30  ;;  %v520_v42 = vsub.f32 %v507_v2, %v518_v30  ;;  %v556_v30 = vshrl.u32 %v555_v55, 7 }
  0x93   :  { %v521_v0 = vmul.f32 %v519_v11, %v519_v11  ;;  %v522_v24 = vmul.f32 %v520_v42, %v520_v42  ;;  %v549_v11 = vmul.f32 %v537_v40, %v379_v22  ;;  %v551_v42 = vmul.f32 1.4142135, %v537_v40  ;;  %v965_v40 = vld [vmem:[%s2730_s2 + $0x20] sm:$0xff] }
  0x95   :  { %v523_v12 = vsel %vm2948_vm2, %v521_v0, 0.0  ;;  %v524_v13 = vsel %vm2949_vm3, %v522_v24, 0.0  ;;  %v557_v0 = vsub.s32 0, %v556_v30 }
  0x96   :  { %v525_v28 = vadd.f32 %v524_v13, %v523_v12 }
  0x98   :  { %v526_v46 = vrot.slane %v525_v28, 4 }
  0x9a   :  { %v527_v15 = vadd.f32 %v526_v46, %v525_v28 }
  0x9c   :  { %v528_v37 = vrot.slane %v527_v15, 2 }
  0x9e   :  { %v529_v35 = vadd.f32 %v528_v37, %v527_v15 }
  0xa0   :  { %v530_v17 = vrot.slane %v529_v35, 1 }
  0xa2   :  { %v531_v18 = vadd.f32 %v530_v17, %v529_v35 }
  0xa4   :  { %v532_v58 = vmul.f32 0.06666667, %v531_v18 }
  0xa6   :  { %v534_v47 = vmul.f32 %v533_v25, %v532_v58 }
  0xa8   :  { %v535_v34 = vmul.f32 %v534_v47, %v533_v25 }
  0xaa   :  { %v538_v2 = vadd.f32 1e-05, %v535_v34 }
  0xac   :  { %957 = vrsqrt.f32 %v538_v2  ;;  %vm541_vm1 = vcmp.eq.f32.partialorder %v538_v2, inf  ;;  %v544_v45 = vand.u32 2147483648, %v538_v2  ;;  %vm543_vm7 = vcmp.eq.f32.partialorder %v538_v2, 0.0 }
  0xb6   :  { %v958_v60 = vpop.eup %957 }
  0xb7   :  { %v540_v31 = vmul.f32 %v958_v60, %v538_v2 }
  0xb9   :  { %v542_v63 = vsel %vm541_vm1, %v538_v2, %v540_v31  ;;  %vm2957_vm1 = vmmov %vm2949_vm3 }
  0xba   :  { %v545_v26 = vsel %vm543_vm7, %v544_v45, %v542_v63  ;;  %v2950_v45 = vld [vmem:[#allocation34_spill] sm:$0xff]  ;;  %vm2958_vm7 = vmmov %vm2957_vm1 }
  0xbb   :  { %v546_v33 = vmul.f32 %v545_v26, %v536_v16 }
  0xbd   :  { %959 = vrcp.f32 %v546_v33  ;;  %v964_v33 = vld [vmem:[%s2730_s2 + $0x18] sm:$0xff] }
  0xc7   :  { %v960_v24 = vpop.eup %959 }
  0xc8   :  { %v550_v12 = vmul.f32 %v960_v24, %v549_v11  ;;  %v552_v13 = vsub.f32 1.0, %v960_v24  ;;  %v966_v11 = vld [vmem:[%s2730_s2 + $0x28] sm:$0xff] }
  0xc9   :  { %v2951_v24 = vld [vmem:[#allocation3_spill] sm:$0xff] }
  0xca   :  { %v553_v28 = vmul.f32 %v552_v13, %v551_v42  ;;  %v1926_v46 = vrot.slane %v550_v12, %v557_v0  ;;  %vm2952_vm11 = vcmp.gt.f32.partialorder %v2951_v24, 0.0  ;;  %v2953_v13 = vld [vmem:[#allocation4_spill] sm:$0xff] }
  0xcb   :  { %vm2954_vm5 = vcmp.gt.f32.partialorder %v2953_v13, 0.0 }
  0xcc   :  { %v560_v15 = vmul.f32 %v1926_v46, %v1524_v48  ;;  %v1930_v5 = vrot.slane %v553_v28, %v557_v0  ;;  %v561_v37 = vmul.f32 %v1926_v46, %v1540_v14  ;;  %v562_v35 = vmul.f32 %v1926_v46, %v1551_v53 }
  0xcd   :  { %v563_v22 = vmul.f32 %v1926_v46, %v1564_v62  ;;  %v564_v17 = vmul.f32 %v1926_v46, %v1577_v23  ;;  %v565_v18 = vmul.f32 %v1926_v46, %v1585_v7  ;;  %v566_v48 = vmul.f32 %v1926_v46, %v1593_v10 }
  0xce   :  { %v598_v25 = vadd.f32 %v1930_v5, %v560_v15  ;;  %v599_v58 = vadd.f32 %v1930_v5, %v561_v37  ;;  %v600_v14 = vadd.f32 %v1930_v5, %v562_v35  ;;  %v567_v53 = vmul.f32 %v1926_v46, %v1601_v54  ;;  %v2955_v15 = vld [vmem:[#allocation5_spill] sm:$0xff] }
  0xcf   :  { %v601_v62 = vadd.f32 %v1930_v5, %v563_v22  ;;  %v602_v47 = vadd.f32 %v1930_v5, %v564_v17  ;;  %v603_v23 = vadd.f32 %v1930_v5, %v565_v18  ;;  %v604_v7 = vadd.f32 %v1930_v5, %v566_v48  ;;  %v968_v35 = vld [vmem:[%s2730_s2 + $0x38] sm:$0xff]  ;;  %v2959_v17 = vld [vmem:[#allocation6_spill] sm:$0xff]  ;;  %v2961_v48 = vld [vmem:[#allocation7_spill] sm:$0xff] }
  0xd0   :  { %v1954_v34 = vmul.f32 %v1495_v19, %v598_v25  ;;  %v1957_v10 = vmul.f32 %v1510_v20, %v599_v58  ;;  %v1960_v2 = vmul.f32 %v1526_v29, %v600_v14  ;;  %v605_v60 = vadd.f32 %v1930_v5, %v567_v53  ;;  %v961_v20 = vld [vmem:[%s2730_s2] sm:$0xff]  ;;  %v2963_v58 = vld [vmem:[#allocation8_spill] sm:$0xff] }
  0xd1   :  { %v1964_v54 = vmul.f32 %v1542_v27, %v601_v62  ;;  %v1967_v31 = vmul.f32 %v2950_v45, %v602_v47  ;;  %v1970_v16 = vmul.f32 %v1568_v3, %v603_v23  ;;  %v1973_v19 = vmul.f32 %v1581_v9, %v604_v7  ;;  %v962_v27 = vld [vmem:[%s2730_s2 + $0x8] sm:$0xff]  ;;  %v963_v3 = vld [vmem:[%s2730_s2 + $0x10] sm:$0xff]  ;;  %v2969_v47 = vld [vmem:[#allocation10_spill] sm:$0xff] }
  0xd2   :  { %v662_v29 = vmul.f32 %v961_v20, %v1954_v34  ;;  %v663_v63 = vmul.f32 %v962_v27, %v1957_v10  ;;  %v664_v26 = vmul.f32 %v963_v3, %v1960_v2  ;;  %v1988_v9 = vmul.f32 %v1589_v1, %v605_v60  ;;  %v967_v1 = vld [vmem:[%s2730_s2 + $0x30] sm:$0xff]  ;;  %v2971_v45 = vld [vmem:[#allocation39_spill] sm:$0xff] }
  0xd3   :  { %v665_v55 = vmul.f32 %v964_v33, %v1964_v54  ;;  %v666_v30 = vmul.f32 %v965_v40, %v1967_v31  ;;  %v667_v42 = vmul.f32 %v966_v11, %v1970_v16  ;;  %v668_v0 = vmul.f32 %v967_v1, %v1973_v19  ;;  %v2976_v33 = vld [vmem:[#allocation47_spill] sm:$0xff] }
  0xd4   :  { %v694_v12 = vsel %vm2952_vm11, %v662_v29, %v1930_v5  ;;  %v695_v28 = vsel %vm2954_vm5, %v663_v63, %v1930_v5  ;;  %vm2956_vm2 = vcmp.gt.f32.partialorder %v2955_v15, 0.0  ;;  %v669_v22 = vmul.f32 %v968_v35, %v1988_v9  ;;  %v2973_v29 = vld [vmem:[#allocation41_spill] sm:$0xff]  ;;  %v2974_v63 = vld [vmem:[#allocation43_spill] sm:$0xff] }
  0xd5   :  { %v696_v37 = vsel %vm2956_vm2, %v664_v26, %v1930_v5  ;;  %726 = vst.msk [vmem:[%s2733_s3] sm:$0xff] %vm2949_vm3, %v694_v12  ;;  %vm2960_vm11 = vcmp.gt.f32.partialorder %v2959_v17, 0.0  ;;  %vm2962_vm5 = vcmp.gt.f32.partialorder %v2961_v48, 0.0  ;;  %vm2964_vm2 = vcmp.gt.f32.partialorder %v2963_v58, 0.0  ;;  %vm2966_vm3 = vmmov %vm2957_vm1  ;;  %v2975_v26 = vld [vmem:[#allocation45_spill] sm:$0xff]  ;;  %v2977_v12 = vld [vmem:[#allocation35_spill] sm:$0xff] }
  0xd6   :  { %727 = vst.msk [vmem:[%s2733_s3 + $0x8] sm:$0xff] %vm2957_vm1, %v695_v28  ;;  %v697_v18 = vsel %vm2960_vm11, %v665_v55, %v1930_v5  ;;  %v698_v25 = vsel %vm2962_vm5, %v666_v30, %v1930_v5  ;;  %v699_v14 = vsel %vm2964_vm2, %v667_v42, %v1930_v5  ;;  %v700_v62 = vsel %vm181_vm6, %v668_v0, %v1930_v5  ;;  %vm2968_vm11 = vmmov %vm2957_vm1  ;;  %v2978_v28 = vld [vmem:[#allocation36_spill] sm:$0xff] }
  0xd7   :  { %728 = vst.msk [vmem:[%s2733_s3 + $0x10] sm:$0xff] %vm2958_vm7, %v696_v37  ;;  %vm2967_vm7 = vmmov %vm2957_vm1  ;;  %vm2970_vm6 = vcmp.gt.f32.partialorder %v2969_v47, 0.0  ;;  %v568_v7 = vmul.f32 %v1926_v46, %v1609_v59  ;;  %v569_v60 = vmul.f32 %v1926_v46, %v1617_v6  ;;  %v570_v20 = vmul.f32 %v1926_v46, %v2971_v45  ;;  %v2979_v37 = vld [vmem:[#allocation37_spill] sm:$0xff] }
  0xd8   :  { %729 = vst.msk [vmem:[%s2733_s3 + $0x18] sm:$0xff] %vm2966_vm3, %v697_v18  ;;  %v701_v23 = vsel %vm2970_vm6, %v669_v22, %v1930_v5  ;;  %vm2972_vm5 = vmmov %vm2957_vm1  ;;  %v571_v27 = vmul.f32 %v1926_v46, %v2973_v29  ;;  %v572_v3 = vmul.f32 %v1926_v46, %v2974_v63  ;;  %v573_v59 = vmul.f32 %v1926_v46, %v2975_v26  ;;  %v2981_v18 = vld [vmem:[#allocation40_spill] sm:$0xff] }
  0xd9   :  { %730 = vst.msk [vmem:[%s2733_s3 + $0x20] sm:$0xff] %vm2957_vm1, %v698_v25  ;;  %v574_v6 = vmul.f32 %v1926_v46, %v2976_v33  ;;  %v606_v55 = vadd.f32 %v1930_v5, %v568_v7  ;;  %v607_v40 = vadd.f32 %v1930_v5, %v569_v60  ;;  %v608_v30 = vadd.f32 %v1930_v5, %v570_v20  ;;  %v2982_v25 = vld [vmem:[#allocation42_spill] sm:$0xff]  ;;  %v971_v60 = vld [vmem:[%s2730_s2 + $0x50] sm:$0xff] }
  0xda   :  { %731 = vst.msk [vmem:[%s2733_s3 + $0x28] sm:$0xff] %vm2967_vm7, %v699_v14  ;;  %v575_v11 = vmul.f32 %v1926_v46, %v1669_v41  ;;  %v609_v42 = vadd.f32 %v1930_v5, %v571_v27  ;;  %v610_v1 = vadd.f32 %v1930_v5, %v572_v3  ;;  %v611_v0 = vadd.f32 %v1930_v5, %v573_v59  ;;  %v2980_v41 = vld [vmem:[#allocation38_spill] sm:$0xff]  ;;  %v2983_v14 = vld [vmem:[#allocation44_spill] sm:$0xff]  ;;  %v972_v27 = vld [vmem:[%s2730_s2 + $0x58] sm:$0xff] }
  0xdb   :  { %732 = vst.msk [vmem:[%s2733_s3 + $0x30] sm:$0xff] %vm2968_vm11, %v700_v62  ;;  %v612_v24 = vadd.f32 %v1930_v5, %v574_v6  ;;  %v2090_v13 = vmul.f32 %v2977_v12, %v606_v55  ;;  %v2093_v15 = vmul.f32 %v2978_v28, %v607_v40  ;;  %v2096_v35 = vmul.f32 %v2979_v37, %v608_v30  ;;  %v969_v62 = vld [vmem:[%s2730_s2 + $0x40] sm:$0xff]  ;;  %v974_v59 = vld [vmem:[%s2730_s2 + $0x68] sm:$0xff]  ;;  %v975_v6 = vld [vmem:[%s2730_s2 + $0x70] sm:$0xff] }
  0xdc   :  { %733 = vst.msk [vmem:[%s2733_s3 + $0x38] sm:$0xff] %vm2972_vm5, %v701_v23  ;;  %v613_v22 = vadd.f32 %v1930_v5, %v575_v11  ;;  %v2100_v17 = vmul.f32 %v2980_v41, %v609_v42  ;;  %v2103_v48 = vmul.f32 %v2981_v18, %v610_v1  ;;  %v2106_v58 = vmul.f32 %v2982_v25, %v611_v0  ;;  %v970_v23 = vld [vmem:[%s2730_s2 + $0x48] sm:$0xff]  ;;  %v2984_v20 = vld [vmem:[#allocation46_spill] sm:$0xff]  ;;  %v2987_v11 = vld [vmem:[#allocation12_spill] sm:$0xff] }
  0xdd   :  { %v2109_v53 = vmul.f32 %v2983_v14, %v612_v24  ;;  %v670_v47 = vmul.f32 %v969_v62, %v2090_v13  ;;  %v671_v7 = vmul.f32 %v970_v23, %v2093_v15  ;;  %v672_v45 = vmul.f32 %v971_v60, %v2096_v35  ;;  %v973_v3 = vld [vmem:[%s2730_s2 + $0x60] sm:$0xff]  ;;  %v2985_v40 = vld [vmem:[#allocation11_spill] sm:$0xff]  ;;  %v976_v24 = vld [vmem:[%s2730_s2 + $0x78] sm:$0xff] }
  0xde   :  { %v2124_v29 = vmul.f32 %v2984_v20, %v613_v22  ;;  %v673_v63 = vmul.f32 %v972_v27, %v2100_v17  ;;  %v674_v26 = vmul.f32 %v973_v3, %v2103_v48  ;;  %v675_v33 = vmul.f32 %v974_v59, %v2106_v58  ;;  %vm2990_vm7 = vmmov %vm2957_vm1  ;;  %v2992_v28 = vld [vmem:[#allocation14_spill] sm:$0xff]  ;;  %v2994_v22 = vld [vmem:[#allocation15_spill] sm:$0xff] }
  0xdf   :  { %v676_v55 = vmul.f32 %v975_v6, %v2109_v53  ;;  %vm2986_vm2 = vcmp.gt.f32.partialorder %v2985_v40, 0.0  ;;  %vm2988_vm3 = vcmp.gt.f32.partialorder %v2987_v11, 0.0  ;;  %v704_v0 = vsel %vm185_vm10, %v672_v45, %v1930_v5  ;;  %vm2991_vm11 = vmmov %vm2957_vm1  ;;  %v2996_v18 = vld [vmem:[#allocation16_spill] sm:$0xff]  ;;  %v2998_v14 = vld [vmem:[#allocation17_spill] sm:$0xff] }
  0xe0   :  { %v702_v30 = vsel %vm2986_vm2, %v670_v47, %v1930_v5  ;;  %v703_v42 = vsel %vm2988_vm3, %v671_v7, %v1930_v5  ;;  %v677_v12 = vmul.f32 %v976_v24, %v2124_v29  ;;  %736 = vst.msk [vmem:[%s2733_s3 + $0x50] sm:$0xff] %vm2991_vm11, %v704_v0  ;;  %vm2993_vm10 = vcmp.gt.f32.partialorder %v2992_v28, 0.0  ;;  %vm3000_vm3 = vmmov %vm2957_vm1  ;;  %v3007_v40 = vld [vmem:[#allocation50_spill] sm:$0xff]  ;;  %v3009_v1 = vld [vmem:[#allocation52_spill] sm:$0xff] }
  0xe1   :  { %734 = vst.msk [vmem:[%s2733_s3 + $0x40] sm:$0xff] %vm2957_vm1, %v702_v30  ;;  %v705_v37 = vsel %vm2993_vm10, %v673_v63, %v1930_v5  ;;  %vm2995_vm6 = vcmp.gt.f32.partialorder %v2994_v22, 0.0  ;;  %vm2997_vm5 = vcmp.gt.f32.partialorder %v2996_v18, 0.0  ;;  %vm2999_vm2 = vcmp.gt.f32.partialorder %v2998_v14, 0.0  ;;  %vm3002_vm11 = vmmov %vm2957_vm1  ;;  %v3010_v24 = vld [vmem:[#allocation53_spill] sm:$0xff]  ;;  %v3011_v28 = vld [vmem:[#allocation54_spill] sm:$0xff] }
  0xe2   :  { %735 = vst.msk [vmem:[%s2733_s3 + $0x48] sm:$0xff] %vm2990_vm7, %v703_v42  ;;  %v706_v41 = vsel %vm2995_vm6, %v674_v26, %v1930_v5  ;;  %v707_v25 = vsel %vm2997_vm5, %v675_v33, %v1930_v5  ;;  %v708_v62 = vsel %vm2999_vm2, %v676_v55, %v1930_v5  ;;  %vm3001_vm7 = vmmov %vm2957_vm1  ;;  %v709_v23 = vsel %vm190_vm15, %v677_v12, %v1930_v5  ;;  %v3005_v33 = vld [vmem:[#allocation48_spill] sm:$0xff]  ;;  %v977_v22 = vld [vmem:[%s2730_s2 + $0x80] sm:$0xff] }
  0xe3   :  { %737 = vst.msk [vmem:[%s2733_s3 + $0x58] sm:$0xff] %vm3000_vm3, %v705_v37  ;;  %v576_v7 = vmul.f32 %v1926_v46, %v1678_v39  ;;  %v577_v60 = vmul.f32 %v1926_v46, %v1687_v8  ;;  %v578_v45 = vmul.f32 %v1926_v46, %v1696_v36  ;;  %vm3004_vm10 = vmmov %vm2957_vm1  ;;  %v579_v20 = vmul.f32 %v1926_v46, %v1705_v21  ;;  %v978_v18 = vld [vmem:[%s2730_s2 + $0x88] sm:$0xff]  ;;  %v979_v14 = vld [vmem:[%s2730_s2 + $0x90] sm:$0xff] }
  0xe4   :  { %738 = vst.msk [vmem:[%s2733_s3 + $0x60] sm:$0xff] %vm2957_vm1, %v706_v41  ;;  %v580_v27 = vmul.f32 %v1926_v46, %v1713_v38  ;;  %v581_v39 = vmul.f32 %v1926_v46, %v1721_v61  ;;  %v582_v8 = vmul.f32 %v1926_v46, %v1730_v43  ;;  %v583_v26 = vmul.f32 %v1926_v46, %v1738_v32  ;;  %v3006_v43 = vld [vmem:[#allocation49_spill] sm:$0xff]  ;;  %v3008_v32 = vld [vmem:[#allocation51_spill] sm:$0xff]  ;;  %vm3018_vm5 = vmmov %vm2957_vm1 }
  0xe5   :  { %739 = vst.msk [vmem:[%s2733_s3 + $0x68] sm:$0xff] %vm3001_vm7, %v707_v25  ;;  %v614_v63 = vadd.f32 %v1930_v5, %v576_v7  ;;  %v615_v36 = vadd.f32 %v1930_v5, %v577_v60  ;;  %v616_v3 = vadd.f32 %v1930_v5, %v578_v45  ;;  %v617_v21 = vadd.f32 %v1930_v5, %v579_v20  ;;  %v3012_v47 = vld [vmem:[#allocation55_spill] sm:$0xff]  ;;  %v980_v7 = vld [vmem:[%s2730_s2 + $0x98] sm:$0xff]  ;;  %v981_v45 = vld [vmem:[%s2730_s2 + $0xa0] sm:$0xff] }
  0xe6   :  { %740 = vst.msk [vmem:[%s2733_s3 + $0x70] sm:$0xff] %vm3002_vm11, %v708_v62  ;;  %v618_v59 = vadd.f32 %v1930_v5, %v580_v27  ;;  %v619_v38 = vadd.f32 %v1930_v5, %v581_v39  ;;  %v620_v61 = vadd.f32 %v1930_v5, %v582_v8  ;;  %v621_v11 = vadd.f32 %v1930_v5, %v583_v26  ;;  %v982_v27 = vld [vmem:[%s2730_s2 + $0xa8] sm:$0xff]  ;;  %v983_v8 = vld [vmem:[%s2730_s2 + $0xb0] sm:$0xff]  ;;  %vm3019_vm2 = vmmov %vm2957_vm1 }
  0xe7   :  { %741 = vst.msk [vmem:[%s2733_s3 + $0x78] sm:$0xff] %vm3004_vm10, %v709_v23  ;;  %v2226_v6 = vmul.f32 %v3005_v33, %v614_v63  ;;  %v2229_v55 = vmul.f32 %v3006_v43, %v615_v36  ;;  %v2232_v30 = vmul.f32 %v3007_v40, %v616_v3  ;;  %v2236_v42 = vmul.f32 %v3008_v32, %v617_v21  ;;  %v3013_v36 = vld [vmem:[#allocation19_spill] sm:$0xff]  ;;  %vm3027_vm7 = vmmov %vm3019_vm2 }
  0xe8   :  { %v2239_v0 = vmul.f32 %v3009_v1, %v618_v59  ;;  %v2242_v12 = vmul.f32 %v3010_v24, %v619_v38  ;;  %v2245_v37 = vmul.f32 %v3011_v28, %v620_v61  ;;  %v2260_v23 = vmul.f32 %v3012_v47, %v621_v11  ;;  %v3016_v59 = vld [vmem:[#allocation21_spill] sm:$0xff]  ;;  %v3023_v1 = vld [vmem:[#allocation24_spill] sm:$0xff]  ;;  %vm3028_vm11 = vmmov %vm3019_vm2 }
  0xe9   :  { %v678_v41 = vmul.f32 %v977_v22, %v2226_v6  ;;  %v679_v25 = vmul.f32 %v978_v18, %v2229_v55  ;;  %v680_v62 = vmul.f32 %v979_v14, %v2232_v30  ;;  %v681_v60 = vmul.f32 %v980_v7, %v2236_v42  ;;  %v984_v61 = vld [vmem:[%s2730_s2 + $0xb8] sm:$0xff] }
  0xea   :  { %v682_v20 = vmul.f32 %v981_v45, %v2239_v0  ;;  %v683_v39 = vmul.f32 %v982_v27, %v2242_v12  ;;  %v684_v63 = vmul.f32 %v983_v8, %v2245_v37  ;;  %vm3014_vm15 = vcmp.gt.f32.partialorder %v3013_v36, 0.0  ;;  %v3025_v28 = vld [vmem:[#allocation25_spill] sm:$0xff]  ;;  %v3036_v36 = vld [vmem:[#allocation58_spill] sm:$0xff] }
  0xeb   :  { %v710_v3 = vsel %vm3014_vm15, %v678_v41, %v1930_v5  ;;  %v711_v21 = vsel %vm192_vm9, %v679_v25, %v1930_v5  ;;  %vm3017_vm6 = vcmp.gt.f32.partialorder %v3016_v59, 0.0  ;;  %v685_v33 = vmul.f32 %v984_v61, %v2260_v23  ;;  %vm3020_vm9 = vmmov %vm2957_vm1  ;;  %v3031_v41 = vld [vmem:[#allocation26_spill] sm:$0xff] }
  0xec   :  { %v712_v38 = vsel %vm3017_vm6, %v680_v62, %v1930_v5  ;;  %742 = vst.msk [vmem:[%s2733_s3 + $0x80] sm:$0xff] %vm3018_vm5, %v710_v3  ;;  %v713_v40 = vsel %vm194_vm13, %v681_v60, %v1930_v5  ;;  %v714_v32 = vsel %vm195_vm14, %v682_v20, %v1930_v5  ;;  %vm3024_vm3 = vcmp.gt.f32.partialorder %v3023_v1, 0.0  ;;  %vm3029_vm13 = vmmov %vm3019_vm2 }
  0xed   :  { %743 = vst.msk [vmem:[%s2733_s3 + $0x88] sm:$0xff] %vm3019_vm2, %v711_v21  ;;  %v715_v24 = vsel %vm3024_vm3, %v683_v39, %v1930_v5  ;;  %vm3026_vm1 = vcmp.gt.f32.partialorder %v3025_v28, 0.0  ;;  %vm3030_vm14 = vmmov %vm3019_vm2  ;;  %vm3032_vm10 = vcmp.gt.f32.partialorder %v3031_v41, 0.0  ;;  %v584_v25 = vmul.f32 %v1926_v46, %v1746_v4  ;;  %v3034_v39 = vld [vmem:[#allocation56_spill] sm:$0xff] }
  0xee   :  { %744 = vst.msk [vmem:[%s2733_s3 + $0x90] sm:$0xff] %vm3020_vm9, %v712_v38  ;;  %v716_v22 = vsel %vm3026_vm1, %v684_v63, %v1930_v5  ;;  %v717_v18 = vsel %vm3032_vm10, %v685_v33, %v1930_v5  ;;  %v585_v14 = vmul.f32 %v1926_v46, %v1754_v49  ;;  %v586_v62 = vmul.f32 %v1926_v46, %v1762_v50  ;;  %vm3033_vm15 = vmmov %vm3019_vm2  ;;  %v3038_v21 = vld [vmem:[#allocation60_spill] sm:$0xff]  ;;  %v3039_v38 = vld [vmem:[#allocation61_spill] sm:$0xff] }
  0xef   :  { %745 = vst.msk [vmem:[%s2733_s3 + $0x98] sm:$0xff] %vm3027_vm7, %v713_v40  ;;  %v587_v47 = vmul.f32 %v1926_v46, %v1770_v51  ;;  %v588_v7 = vmul.f32 %v1926_v46, %v1778_v52  ;;  %v589_v4 = vmul.f32 %v1926_v46, %v1786_v56  ;;  %v590_v49 = vmul.f32 %v1926_v46, %v1794_v57  ;;  %v3035_v57 = vld [vmem:[#allocation57_spill] sm:$0xff]  ;;  %v3040_v33 = vld [vmem:[#allocation62_spill] sm:$0xff]  ;;  %vm3046_vm5 = vmmov %vm3019_vm2 }
  0xf0   :  { %746 = vst.msk [vmem:[%s2733_s3 + $0xa0] sm:$0xff] %vm3028_vm11, %v714_v32  ;;  %v622_v60 = vadd.f32 %v1930_v5, %v584_v25  ;;  %v623_v50 = vadd.f32 %v1930_v5, %v585_v14  ;;  %v624_v45 = vadd.f32 %v1930_v5, %v586_v62  ;;  %v591_v20 = vmul.f32 %v1926_v46, %v1800_v44  ;;  %v3037_v44 = vld [vmem:[#allocation59_spill] sm:$0xff]  ;;  %v985_v40 = vld [vmem:[%s2730_s2 + $0xc0] sm:$0xff]  ;;  %vm3054_vm3 = vmmov %vm3019_vm2 }
  0xf1   :  { %747 = vst.msk [vmem:[%s2733_s3 + $0xa8] sm:$0xff] %vm3029_vm13, %v715_v24  ;;  %v625_v51 = vadd.f32 %v1930_v5, %v587_v47  ;;  %v626_v27 = vadd.f32 %v1930_v5, %v588_v7  ;;  %v627_v52 = vadd.f32 %v1930_v5, %v589_v4  ;;  %v628_v56 = vadd.f32 %v1930_v5, %v590_v49  ;;  %v986_v32 = vld [vmem:[%s2730_s2 + $0xc8] sm:$0xff]  ;;  %v987_v24 = vld [vmem:[%s2730_s2 + $0xd0] sm:$0xff]  ;;  %v989_v14 = vld [vmem:[%s2730_s2 + $0xe0] sm:$0xff] }
  0xf2   :  { %748 = vst.msk [vmem:[%s2733_s3 + $0xb0] sm:$0xff] %vm3030_vm14, %v716_v22  ;;  %v2362_v8 = vmul.f32 %v3034_v39, %v622_v60  ;;  %v2365_v63 = vmul.f32 %v3035_v57, %v623_v50  ;;  %v2368_v3 = vmul.f32 %v3036_v36, %v624_v45  ;;  %v629_v26 = vadd.f32 %v1930_v5, %v591_v20  ;;  %v3041_v22 = vld [vmem:[#allocation63_spill] sm:$0xff]  ;;  %v991_v4 = vld [vmem:[%s2730_s2 + $0xf0] sm:$0xff]  ;;  %vm3055_vm1 = vmmov %vm3019_vm2 }
  0xf3   :  { %749 = vst.msk [vmem:[%s2733_s3 + $0xb8] sm:$0xff] %vm3033_vm15, %v717_v18  ;;  %v2372_v46 = vmul.f32 %v3037_v44, %v625_v51  ;;  %v2375_v59 = vmul.f32 %v3038_v21, %v626_v27  ;;  %v2378_v61 = vmul.f32 %v3039_v38, %v627_v52  ;;  %v2381_v43 = vmul.f32 %v3040_v33, %v628_v56  ;;  %v988_v18 = vld [vmem:[%s2730_s2 + $0xd8] sm:$0xff]  ;;  %v990_v47 = vld [vmem:[%s2730_s2 + $0xe8] sm:$0xff]  ;;  %v3043_v45 = vld [vmem:[#allocation28_spill] sm:$0xff] }
  0xf4   :  { %v686_v11 = vmul.f32 %v985_v40, %v2362_v8  ;;  %v687_v1 = vmul.f32 %v986_v32, %v2365_v63  ;;  %v688_v28 = vmul.f32 %v987_v24, %v2368_v3  ;;  %v2396_v41 = vmul.f32 %v3041_v22, %v629_v26  ;;  %v992_v52 = vld [vmem:[%s2730_s2 + $0xf8] sm:$0xff]  ;;  %v3049_v36 = vld [vmem:[#allocation31_spill] sm:$0xff]  ;;  %v3058_v40 = vld [vmem:[#allocation2_spill] sm:$0xff] }
  0xf5   :  { %v689_v25 = vmul.f32 %v988_v18, %v2372_v46  ;;  %v690_v62 = vmul.f32 %v989_v14, %v2375_v59  ;;  %v691_v7 = vmul.f32 %v990_v47, %v2378_v61  ;;  %v692_v49 = vmul.f32 %v991_v4, %v2381_v43  ;;  %v3052_v38 = vld [vmem:[#allocation33_spill] sm:$0xff]  ;;  %v993_v32 = vld [vmem:[%s2730_s2 + $0x100] sm:$0xff]  ;;  %v994_v24 = vld [vmem:[%s2730_s2 + $0x108] sm:$0xff] }
  0xf6   :  { %v718_v50 = vsel %vm199_vm12, %v686_v11, %v1930_v5  ;;  %vm3044_vm6 = vcmp.gt.f32.partialorder %v3043_v45, 0.0  ;;  %v720_v27 = vsel %vm201_vm0, %v688_v28, %v1930_v5  ;;  %v693_v56 = vmul.f32 %v992_v52, %v2396_v41  ;;  %vm3047_vm12 = vmmov %vm3019_vm2  ;;  %v995_v22 = vld [vmem:[%s2730_s2 + $0x110] sm:$0xff] }
  0xf7   :  { %v719_v20 = vsel %vm3044_vm6, %v687_v1, %v1930_v5  ;;  %750 = vst.msk [vmem:[%s2733_s3 + $0xc0] sm:$0xff] %vm3046_vm5, %v718_v50  ;;  %v721_v57 = vsel %vm202_vm8, %v689_v25, %v1930_v5  ;;  %vm3050_vm0 = vcmp.gt.f32.partialorder %v3049_v36, 0.0  ;;  %v723_v21 = vsel %vm204_vm4, %v691_v7, %v1930_v5  ;;  %vm3056_vm8 = vmmov %vm3055_vm1  ;;  %v1002_v7 = vld [vmem:[%s2730_s2 + $0x148] sm:$0xff] }
  0xf8   :  { %751 = vst.msk [vmem:[%s2733_s3 + $0xc8] sm:$0xff] %vm3047_vm12, %v719_v20  ;;  %v722_v26 = vsel %vm3050_vm0, %v690_v62, %v1930_v5  ;;  %vm3053_vm9 = vcmp.gt.f32.partialorder %v3052_v38, 0.0  ;;  %vm3057_vm4 = vmmov %vm3055_vm1  ;;  %vm3059_vm7 = vcmp.gt.f32.partialorder %v3058_v40, 0.0  ;;  %v758_v1 = vmul.f32 %v993_v32, %v1954_v34  ;;  %v999_v62 = vld [vmem:[%s2730_s2 + $0x130] sm:$0xff]  ;;  %v1006_v50 = vld [vmem:[%s2730_s2 + $0x168] sm:$0xff] }
  0xf9   :  { %752 = vst.msk [vmem:[%s2733_s3 + $0xd0] sm:$0xff] %vm3019_vm2, %v720_v27  ;;  %v724_v33 = vsel %vm3053_vm9, %v692_v49, %v1930_v5  ;;  %v725_v11 = vsel %vm3059_vm7, %v693_v56, %v1930_v5  ;;  %v759_v28 = vmul.f32 %v994_v24, %v1957_v10  ;;  %v760_v18 = vmul.f32 %v995_v22, %v1960_v2  ;;  %vm3060_vm11 = vmmov %vm3055_vm1  ;;  %v996_v5 = vld [vmem:[%s2730_s2 + $0x118] sm:$0xff]  ;;  %v997_v10 = vld [vmem:[%s2730_s2 + $0x120] sm:$0xff] }
  0xfa   :  { %753 = vst.msk [vmem:[%s2733_s3 + $0xd8] sm:$0xff] %vm3054_vm3, %v721_v57  ;;  %v761_v34 = vmul.f32 %v996_v5, %v1964_v54  ;;  %v762_v25 = vmul.f32 %v997_v10, %v1967_v31  ;;  %v998_v2 = vld [vmem:[%s2730_s2 + $0x128] sm:$0xff]  ;;  %v764_v47 = vmul.f32 %v999_v62, %v1973_v19  ;;  %vm3061_vm13 = vmmov %vm3055_vm1  ;;  %v1000_v54 = vld [vmem:[%s2730_s2 + $0x138] sm:$0xff]  ;;  %v767_v4 = vmul.f32 %v1002_v7, %v2093_v15 }
  0xfb   :  { %754 = vst.msk [vmem:[%s2733_s3 + $0xe0] sm:$0xff] %vm3055_vm1, %v722_v26  ;;  %v763_v14 = vmul.f32 %v998_v2, %v1970_v16  ;;  %vm3062_vm14 = vmmov %vm3055_vm1  ;;  %v765_v31 = vmul.f32 %v1000_v54, %v1988_v9  ;;  %v1001_v16 = vld [vmem:[%s2730_s2 + $0x140] sm:$0xff]  ;;  %v1003_v49 = vld [vmem:[%s2730_s2 + $0x150] sm:$0xff]  ;;  %v771_v45 = vmul.f32 %v1006_v50, %v2106_v58 }
  0xfc   :  { %755 = vst.msk [vmem:[%s2733_s3 + $0xe8] sm:$0xff] %vm3056_vm8, %v723_v21  ;;  %vm3063_vm10 = vmmov %vm3055_vm1  ;;  %v766_v19 = vmul.f32 %v1001_v16, %v2090_v13  ;;  %v768_v60 = vmul.f32 %v1003_v49, %v2096_v35  ;;  %v1004_v9 = vld [vmem:[%s2730_s2 + $0x158] sm:$0xff]  ;;  %v1005_v15 = vld [vmem:[%s2730_s2 + $0x160] sm:$0xff] }
  0xfd   :  { %756 = vst.msk [vmem:[%s2733_s3 + $0xf0] sm:$0xff] %vm3057_vm4, %v724_v33  ;;  %vm3064_vm15 = vmmov %vm3055_vm1  ;;  %v769_v13 = vmul.f32 %v1004_v9, %v2100_v17  ;;  %v770_v35 = vmul.f32 %v1005_v15, %v2103_v48  ;;  %v1007_v20 = vld [vmem:[%s2730_s2 + $0x170] sm:$0xff]  ;;  %v1008_v17 = vld [vmem:[%s2730_s2 + $0x178] sm:$0xff] }
  0xfe   :  { %757 = vst.msk [vmem:[%s2733_s3 + $0xf8] sm:$0xff] %vm3060_vm11, %v725_v11  ;;  %vm3065_vm6 = vmmov %vm3055_vm1  ;;  %v772_v51 = vmul.f32 %v1007_v20, %v2109_v53  ;;  %v773_v48 = vmul.f32 %v1008_v17, %v2124_v29  ;;  %v1009_v58 = vld [vmem:[%s2730_s2 + $0x180] sm:$0xff]  ;;  %v1010_v27 = vld [vmem:[%s2730_s2 + $0x188] sm:$0xff] }
  0xff   :  { %859 = vst.msk [vmem:[%s2733_s3 + $0x100] sm:$0xff] %vm3061_vm13, %v758_v1  ;;  %vm3066_vm5 = vmmov %vm3055_vm1  ;;  %v774_v53 = vmul.f32 %v1009_v58, %v2226_v6  ;;  %v775_v52 = vmul.f32 %v1010_v27, %v2229_v55  ;;  %v1011_v56 = vld [vmem:[%s2730_s2 + $0x190] sm:$0xff]  ;;  %v1012_v29 = vld [vmem:[%s2730_s2 + $0x198] sm:$0xff] }
 0x100   :  { %860 = vst.msk [vmem:[%s2733_s3 + $0x108] sm:$0xff] %vm3062_vm14, %v759_v28  ;;  %vm3067_vm12 = vmmov %vm3055_vm1  ;;  %v776_v39 = vmul.f32 %v1011_v56, %v2232_v30  ;;  %v777_v6 = vmul.f32 %v1012_v29, %v2236_v42  ;;  %v1013_v55 = vld [vmem:[%s2730_s2 + $0x1a0] sm:$0xff]  ;;  %v1014_v57 = vld [vmem:[%s2730_s2 + $0x1a8] sm:$0xff] }
 0x101   :  { %861 = vst.msk [vmem:[%s2733_s3 + $0x110] sm:$0xff] %vm3063_vm10, %v760_v18  ;;  %vm3068_vm2 = vmmov %vm3055_vm1  ;;  %v778_v30 = vmul.f32 %v1013_v55, %v2239_v0  ;;  %v779_v36 = vmul.f32 %v1014_v57, %v2242_v12  ;;  %v1015_v26 = vld [vmem:[%s2730_s2 + $0x1b0] sm:$0xff]  ;;  %v1016_v42 = vld [vmem:[%s2730_s2 + $0x1b8] sm:$0xff] }
 0x102   :  { %862 = vst.msk [vmem:[%s2733_s3 + $0x118] sm:$0xff] %vm3064_vm15, %v761_v34  ;;  %vm3069_vm0 = vmmov %vm3055_vm1  ;;  %v780_v44 = vmul.f32 %v1015_v26, %v2245_v37  ;;  %v781_v0 = vmul.f32 %v1016_v42, %v2260_v23  ;;  %v1017_v12 = vld [vmem:[%s2730_s2 + $0x1c0] sm:$0xff]  ;;  %v1018_v21 = vld [vmem:[%s2730_s2 + $0x1c8] sm:$0xff] }
 0x103   :  { %863 = vst.msk [vmem:[%s2733_s3 + $0x120] sm:$0xff] %vm3065_vm6, %v762_v25  ;;  %vm3070_vm9 = vmmov %vm3069_vm0  ;;  %v782_v37 = vmul.f32 %v1017_v12, %v2362_v8  ;;  %v783_v38 = vmul.f32 %v1018_v21, %v2365_v63  ;;  %v1019_v33 = vld [vmem:[%s2730_s2 + $0x1d0] sm:$0xff]  ;;  %v1020_v23 = vld [vmem:[%s2730_s2 + $0x1d8] sm:$0xff] }
 0x104   :  { %864 = vst.msk [vmem:[%s2733_s3 + $0x128] sm:$0xff] %vm3066_vm5, %v763_v14  ;;  %vm3071_vm3 = vmmov %vm3069_vm0  ;;  %v784_v40 = vmul.f32 %v1019_v33, %v2368_v3  ;;  %v785_v8 = vmul.f32 %v1020_v23, %v2372_v46  ;;  %v1021_v63 = vld [vmem:[%s2730_s2 + $0x1e0] sm:$0xff]  ;;  %v1022_v11 = vld [vmem:[%s2730_s2 + $0x1e8] sm:$0xff] }
 0x105   :  { %865 = vst.msk [vmem:[%s2733_s3 + $0x130] sm:$0xff] %vm3067_vm12, %v764_v47  ;;  %vm3072_vm1 = vmmov %vm3069_vm0  ;;  %v786_v3 = vmul.f32 %v1021_v63, %v2375_v59  ;;  %v787_v32 = vmul.f32 %v1022_v11, %v2378_v61  ;;  %v1023_v1 = vld [vmem:[%s2730_s2 + $0x1f0] sm:$0xff]  ;;  %v1024_v46 = vld [vmem:[%s2730_s2 + $0x1f8] sm:$0xff] }
 0x106   :  { %866 = vst.msk [vmem:[%s2733_s3 + $0x138] sm:$0xff] %vm3068_vm2, %v765_v31  ;;  %vm3073_vm8 = vmmov %vm3069_vm0  ;;  %v788_v24 = vmul.f32 %v1023_v1, %v2381_v43  ;;  %v789_v59 = vmul.f32 %v1024_v46, %v2396_v41 }
 0x107   :  { %867 = vst.msk [vmem:[%s2733_s3 + $0x140] sm:$0xff] %vm3069_vm0, %v766_v19  ;;  %vm3074_vm4 = vmmov %vm3069_vm0 }
 0x108   :  { %868 = vst.msk [vmem:[%s2733_s3 + $0x148] sm:$0xff] %vm3070_vm9, %v767_v4  ;;  %vm3075_vm7 = vmmov %vm3069_vm0 }
 0x109   :  { %869 = vst.msk [vmem:[%s2733_s3 + $0x150] sm:$0xff] %vm3071_vm3, %v768_v60  ;;  %vm3076_vm11 = vmmov %vm3069_vm0 }
 0x10a   :  { %870 = vst.msk [vmem:[%s2733_s3 + $0x158] sm:$0xff] %vm3072_vm1, %v769_v13  ;;  %vm3077_vm13 = vmmov %vm3069_vm0 }
 0x10b   :  { %871 = vst.msk [vmem:[%s2733_s3 + $0x160] sm:$0xff] %vm3073_vm8, %v770_v35  ;;  %vm3078_vm14 = vmmov %vm3069_vm0 }
 0x10c   :  { %872 = vst.msk [vmem:[%s2733_s3 + $0x168] sm:$0xff] %vm3074_vm4, %v771_v45  ;;  %vm3079_vm10 = vmmov %vm3069_vm0 }
 0x10d   :  { %873 = vst.msk [vmem:[%s2733_s3 + $0x170] sm:$0xff] %vm3075_vm7, %v772_v51  ;;  %vm3080_vm15 = vmmov %vm3069_vm0 }
 0x10e   :  { %874 = vst.msk [vmem:[%s2733_s3 + $0x178] sm:$0xff] %vm3076_vm11, %v773_v48  ;;  %vm3081_vm6 = vmmov %vm3069_vm0 }
 0x10f   :  { %875 = vst.msk [vmem:[%s2733_s3 + $0x180] sm:$0xff] %vm3077_vm13, %v774_v53  ;;  %vm3082_vm5 = vmmov %vm3069_vm0 }
 0x110   :  { %876 = vst.msk [vmem:[%s2733_s3 + $0x188] sm:$0xff] %vm3078_vm14, %v775_v52  ;;  %vm3083_vm12 = vmmov %vm3069_vm0 }
 0x111   :  { %877 = vst.msk [vmem:[%s2733_s3 + $0x190] sm:$0xff] %vm3079_vm10, %v776_v39  ;;  %vm3084_vm2 = vmmov %vm3069_vm0 }
 0x112   :  { %878 = vst.msk [vmem:[%s2733_s3 + $0x198] sm:$0xff] %vm3080_vm15, %v777_v6  ;;  %vm3085_vm9 = vmmov %vm3069_vm0 }
 0x113   :  { %879 = vst.msk [vmem:[%s2733_s3 + $0x1a0] sm:$0xff] %vm3081_vm6, %v778_v30  ;;  %vm3086_vm3 = vmmov %vm3069_vm0 }
 0x114   :  { %880 = vst.msk [vmem:[%s2733_s3 + $0x1a8] sm:$0xff] %vm3082_vm5, %v779_v36  ;;  %vm3087_vm1 = vmmov %vm3069_vm0 }
 0x115   :  { %881 = vst.msk [vmem:[%s2733_s3 + $0x1b0] sm:$0xff] %vm3083_vm12, %v780_v44  ;;  %vm3088_vm8 = vmmov %vm3069_vm0 }
 0x116   :  { %882 = vst.msk [vmem:[%s2733_s3 + $0x1b8] sm:$0xff] %vm3084_vm2, %v781_v0  ;;  %vm3089_vm4 = vmmov %vm3069_vm0 }
 0x117   :  { %883 = vst.msk [vmem:[%s2733_s3 + $0x1c0] sm:$0xff] %vm3069_vm0, %v782_v37  ;;  %vm3090_vm7 = vmmov %vm3069_vm0 }
 0x118   :  { %884 = vst.msk [vmem:[%s2733_s3 + $0x1c8] sm:$0xff] %vm3085_vm9, %v783_v38  ;;  %vm3091_vm11 = vmmov %vm3069_vm0 }
 0x119   :  { %885 = vst.msk [vmem:[%s2733_s3 + $0x1d0] sm:$0xff] %vm3086_vm3, %v784_v40 }
 0x11a   :  { %886 = vst.msk [vmem:[%s2733_s3 + $0x1d8] sm:$0xff] %vm3087_vm1, %v785_v8 }
 0x11b   :  { %887 = vst.msk [vmem:[%s2733_s3 + $0x1e0] sm:$0xff] %vm3088_vm8, %v786_v3 }
 0x11c   :  { %888 = vst.msk [vmem:[%s2733_s3 + $0x1e8] sm:$0xff] %vm3089_vm4, %v787_v32 }
 0x11d   :  { %889 = vst.msk [vmem:[%s2733_s3 + $0x1f0] sm:$0xff] %vm3090_vm7, %v788_v24 }
 0x11e   :  { %890 = vst.msk [vmem:[%s2733_s3 + $0x1f8] sm:$0xff] %vm3091_vm11, %v789_v59 }

</bundles_post_ra>
